<compile_context>
chip_gen: v7x
topology: tpu7x:2x2x1
jax: 0.10.0
libtpu: 0.0.40
codegen_flags: <defaults>
</compile_context>

<pallas_src>
import functools

import jax
import jax.numpy as jnp
from jax.experimental import pallas as pl
from jax.experimental.pallas import tpu as pltpu


def _round_up(x, m):
    return -(-x // m) * m


def _resblock_kernel(x_ref, w1_ref, w2_ref, o_ref, pad_ref, im2col_ref, *,
                     G, Cp, H, W, Lp, eps):
    """Fused ResBlock for G images (all data stays in VMEM between the convs).

    x_ref      : (G, Cp, NP)  zero-padded, Wp-strided, lane-padded input
    w1/w2_ref  : (Cp, 9*Cp)   weights, column index = (kh*3+kw)*Cp + ci
    o_ref      : (G, Cp, Lp)  output in the same Wp-strided span layout
    pad_ref    : (Cp, NP) f32 scratch: zero-padded intermediate activation
    im2col_ref : (9*Cp, Lp)   scratch: stacked shifted views (8-aligned slabs)
    """
    Wp = W + 2
    center = Wp + 1
    inv_n = 1.0 / float(H * W)

    # Validity mask over the Lp span columns: column c maps to (h, w) =
    # (c // Wp, c % Wp); valid iff h < H and w < W.  Built from a 2-D iota with
    # a float floor trick (exact for these ranges; avoids vector int div/mod).
    col = jax.lax.broadcasted_iota(jnp.int32, (1, Lp), 1).astype(jnp.float32)
    row = jnp.floor((col + 0.5) * (1.0 / Wp))
    wpos = col - row * Wp
    mask = jnp.where(jnp.logical_and(row < H, wpos < W), 1.0, 0.0)   # (1, Lp)

    tap_offsets = [kh * Wp + kw for kh in range(3) for kw in range(3)]

    def conv_in(load_tap, w_ref_, relu):
        # ---- im2col: 9 shifted (Cp, Lp) views; each store is an 8-aligned
        #      sublane slab over the full (128-multiple) lane extent ----------
        for t, off in enumerate(tap_offsets):
            im2col_ref[t * Cp:(t + 1) * Cp, :] = load_tap(off)
        # ---- single MXU matmul, K = 9*Cp, lane-dense N = Lp ------------------
        o = jnp.dot(w_ref_[...], im2col_ref[...],
                    preferred_element_type=jnp.float32)              # (Cp, Lp)
        # ---- one-pass InstanceNorm stats over the H*W valid columns ----------
        om = o * mask
        s1 = jnp.sum(om, axis=1, keepdims=True)                      # (Cp, 1)
        s2 = jnp.sum(om * om, axis=1, keepdims=True)                 # (Cp, 1)
        mean = s1 * inv_n
        var = jnp.maximum(s2 * inv_n - mean * mean, 0.0)
        y = (o - mean) * jax.lax.rsqrt(var + eps)
        if relu:
            y = jnp.maximum(y, 0.0)
        return y                                                     # (Cp, Lp)

    # Zero the re-pad scratch ONCE per grid step: only its padding ring is ever
    # read un-overwritten; the interior [center, center+Lp) is fully rewritten
    # per image below.  (Unconditional so every core's scratch instance is
    # initialized under "parallel" grid semantics.)
    pad_ref[...] = jnp.zeros_like(pad_ref)

    for g in range(G):
        # ---- block 1: conv -> IN -> ReLU, straight from the pre-padded input
        y1 = conv_in(lambda off: x_ref[g, :, off:off + Lp].astype(jnp.float32),
                     w1_ref, relu=True)
        # ---- re-pad y1: ghost columns zeroed via mask, one shifted slab store
        pad_ref[:, center:center + Lp] = y1 * mask
        # ---- block 2: conv -> IN --------------------------------------------
        y2 = conv_in(lambda off: pad_ref[:, off:off + Lp], w2_ref, relu=False)
        # ---- residual add + one lane-dense full-block store ------------------
        o_ref[g] = (y2 + x_ref[g, :, center:center + Lp].astype(jnp.float32)
                    ).astype(o_ref.dtype)


def _default_images_per_step(batch):
    """v7x has 2 TensorCores/chip -> keep one image per grid step (parallel);
    v5e/v6e are single-TC -> fold the whole batch into one step (halves the
    fixed per-step overhead, which dominates at these tiny shapes)."""
    try:
        kind = jax.devices()[0].device_kind.lower()
    except Exception:
        kind = ""
    if "v7" in kind or "7x" in kind:
        return 1
    return batch


def resblock_forward(x_nchw, w1_hwio, w2_hwio, *, eps=1e-5, images_per_step=None):
    """ResBlock.forward: out = IN(conv2(relu(IN(conv1(x))))) + x  (bias=False).

    x_nchw: (B, C, H, W); weights HWIO (3, 3, C, C).
    """
    B, C, H, W = x_nchw.shape
    Hp, Wp = H + 2, W + 2
    Cp = _round_up(max(C, 8), 8)               # channel pad -> 8-aligned sublane slabs
    span = H * Wp                              # conv-output span (Wp-strided)
    Lp = _round_up(span, 128)                  # lane-dense span extent
    tap_max = 2 * Wp + 2                       # deepest tap offset (kh=kw=2)
    NP = _round_up(max(Hp * Wp, tap_max + Lp), 128)   # padded-image lane extent

    # Wrapper-side prep (tiny, plain XLA): zero-pad channels + spatial ring,
    # flatten to Wp-strided layout, pad lanes so all in-kernel reads stay
    # inside the block -> no in-kernel pad fill, no per-row copies.
    xp = jnp.pad(x_nchw, ((0, 0), (0, Cp - C), (1, 1), (1, 1)))
    xf = jnp.pad(xp.reshape(B, Cp, Hp * Wp), ((0, 0), (0, 0), (0, NP - Hp * Wp)))

    # HWIO (3,3,C,C) -> zero-pad to (3,3,Cp,Cp) -> (Cp_out, 9*Cp_in), column
    # order (kh*3+kw)*Cp + ci, matching the im2col sublane slabs.
    def prep_w(w):
        wpad = jnp.pad(w, ((0, 0), (0, 0), (0, Cp - C), (0, Cp - C)))
        return jnp.transpose(wpad.reshape(9 * Cp, Cp)).astype(jnp.float32)

    w1t, w2t = prep_w(w1_hwio), prep_w(w2_hwio)

    if images_per_step is None:
        images_per_step = _default_images_per_step(B)
    G = images_per_step
    if B % G != 0:
        G = 1
    grid = (B // G,)

    kernel = functools.partial(_resblock_kernel, G=G, Cp=Cp, H=H, W=W, Lp=Lp, eps=eps)
    out_span = pl.pallas_call(
        kernel,
        out_shape=jax.ShapeDtypeStruct((B, Cp, Lp), x_nchw.dtype),
        grid_spec=pltpu.PrefetchScalarGridSpec(
            num_scalar_prefetch=0,
            grid=grid,
            in_specs=[
                pl.BlockSpec((G, Cp, NP), lambda b: (b, 0, 0)),
                pl.BlockSpec((Cp, 9 * Cp), lambda b: (0, 0)),
                pl.BlockSpec((Cp, 9 * Cp), lambda b: (0, 0)),
            ],
            out_specs=pl.BlockSpec((G, Cp, Lp), lambda b: (b, 0, 0)),
            # Scaling guard: total scratch here is < 200 KB, far below any
            # chip's VMEM.  The im2col scratch grows as 9*Cp*H*Wp*4 B; for
            # production sizes (e.g. C=256, 64x64 maps) it would blow past
            # v7x's 64 MiB VMEM -- in that regime add a row-strip grid axis
            # over H (halo of 1 row) or per-kh accumulation, and set
            # vmem_limit_bytes via pltpu.CompilerParams.
            scratch_shapes=[
                pltpu.VMEM((Cp, NP), jnp.float32),       # padded intermediate
                pltpu.VMEM((9 * Cp, Lp), jnp.float32),   # aligned im2col
            ],
        ),
        compiler_params=pltpu.CompilerParams(
            dimension_semantics=("parallel",)),
    )(xf, w1t, w2t)

    # Strip lane padding / ghost columns / channel padding (cheap XLA ops).
    out = out_span[:, :C, :span].reshape(B, C, H, Wp)[:, :, :, :W]
    return out


def _ref_forward(x_nchw, w1, w2, eps=1e-5):
    """Pure-JAX reference mirroring the PyTorch module semantics."""
    def conv(x, w):
        w_oihw = jnp.transpose(w, (3, 2, 0, 1))
        return jax.lax.conv_general_dilated(
            x, w_oihw, window_strides=(1, 1), padding=((1, 1), (1, 1)),
            dimension_numbers=("NCHW", "OIHW", "NCHW"))

    def inorm(x):
        mean = jnp.mean(x, axis=(2, 3), keepdims=True)
        var = jnp.mean((x - mean) ** 2, axis=(2, 3), keepdims=True)
        return (x - mean) * jax.lax.rsqrt(var + eps)

    out = jax.nn.relu(inorm(conv(x_nchw, w1)))
    out = inorm(conv(out, w2))
    return out + x_nchw


if __name__ == "__main__":
    key = jax.random.PRNGKey(0)
    k1, k2, k3 = jax.random.split(key, 3)
    B, C, H, W = 2, 4, 16, 16
    x = jax.random.normal(k1, (B, C, H, W), jnp.float32)

    # Deterministic synthetic weights (Conv2d(dim, dim, 3, bias=False)), HWIO.
    fan_in = C * 3 * 3
    w1 = jax.random.normal(k2, (3, 3, C, C), jnp.float32) / jnp.sqrt(fan_in)
    w2 = jax.random.normal(k3, (3, 3, C, C), jnp.float32) / jnp.sqrt(fan_in)

    fwd = jax.jit(resblock_forward)
    out = jax.block_until_ready(fwd(x, w1, w2))
    ref = jax.block_until_ready(_ref_forward(x, w1, w2))

    assert out.shape == (B, C, H, W)
    max_err = float(jnp.max(jnp.abs(out - ref)))
    assert jnp.allclose(out, ref, atol=1e-4, rtol=1e-4), max_err
    print("KERNEL_OK")
</pallas_src>

<mosaic_0001>
module attributes {stable_mosaic.version = 11 : i64} {
  func.func @_resblock_kernel(%arg0: i32, %arg1: memref<2x8x512xf32, #tpu.memory_space<vmem>>, %arg2: memref<8x72xf32, #tpu.memory_space<vmem>>, %arg3: memref<8x72xf32, #tpu.memory_space<vmem>>, %arg4: memref<2x8x384xf32, #tpu.memory_space<vmem>>, %arg5: memref<8x512xf32, #tpu.memory_space<vmem>>, %arg6: memref<72x384xf32, #tpu.memory_space<vmem>>) attributes {dimension_semantics = [#tpu.dimension_semantics<parallel>], iteration_bounds = array<i64: 1>, scalar_prefetch = 0 : i64, scratch_operands = 2 : i64, tpu.core_type = #tpu.core_type<tc>, window_params = [{transform_indices = @transform_0, window_bounds = array<i64: 2, 8, 512>}, {pipeline_mode = #tpu.pipeline_mode<synchronous>, transform_indices = @transform_1, window_bounds = array<i64: 8, 72>}, {pipeline_mode = #tpu.pipeline_mode<synchronous>, transform_indices = @transform_2, window_bounds = array<i64: 8, 72>}, {transform_indices = @transform_3, window_bounds = array<i64: 2, 8, 384>}]} {
    %0 = tpu.iota {dimensions = array<i32: 1>} : vector<1x384xi32>
    %1 = arith.sitofp %0 : vector<1x384xi32> to vector<1x384xf32>
    %cst = arith.constant 5.000000e-01 : f32
    %2 = vector.broadcast %cst : f32 to vector<1x384xf32>
    %3 = arith.addf %1, %2 : vector<1x384xf32>
    %cst_0 = arith.constant 0.055555556 : f32
    %4 = vector.broadcast %cst_0 : f32 to vector<1x384xf32>
    %5 = arith.mulf %3, %4 : vector<1x384xf32>
    %6 = math.floor %5 : vector<1x384xf32>
    %cst_1 = arith.constant 1.800000e+01 : f32
    %7 = vector.broadcast %cst_1 : f32 to vector<1x384xf32>
    %8 = arith.mulf %6, %7 : vector<1x384xf32>
    %9 = arith.subf %1, %8 : vector<1x384xf32>
    %cst_2 = arith.constant 1.600000e+01 : f32
    %10 = vector.broadcast %cst_2 : f32 to vector<1x384xf32>
    %11 = arith.cmpf olt, %6, %10 : vector<1x384xf32>
    %cst_3 = arith.constant 1.600000e+01 : f32
    %12 = vector.broadcast %cst_3 : f32 to vector<1x384xf32>
    %13 = arith.cmpf olt, %9, %12 : vector<1x384xf32>
    %14 = arith.andi %11, %13 : vector<1x384xi1>
    %cst_4 = arith.constant 1.000000e+00 : f32
    %cst_5 = arith.constant 0.000000e+00 : f32
    %15 = vector.broadcast %cst_4 : f32 to vector<1x384xf32>
    %16 = vector.broadcast %cst_5 : f32 to vector<1x384xf32>
    %17 = arith.select %14, %15, %16 : vector<1x384xi1>, vector<1x384xf32>
    %cst_6 = arith.constant 0.000000e+00 : f32
    %18 = vector.broadcast %cst_6 : f32 to vector<8x512xf32>
    %c0 = arith.constant 0 : index
    %c0_7 = arith.constant 0 : index
    %19 = vector.load %arg5[%c0, %c0_7] : memref<8x512xf32, #tpu.memory_space<vmem>>, vector<8x512xf32>
    tpu.vector_store %arg5[%c0, %c0_7], %18 {strides = array<i32>} : memref<8x512xf32, #tpu.memory_space<vmem>>, vector<8x512xf32>,
    %c0_8 = arith.constant 0 : index
    %c0_9 = arith.constant 0 : index
    %c0_10 = arith.constant 0 : index
    %20 = vector.load %arg1[%c0_8, %c0_9, %c0_10] : memref<2x8x512xf32, #tpu.memory_space<vmem>>, vector<1x8x384xf32>
    %21 = vector.shape_cast %20 : vector<1x8x384xf32> to vector<8x384xf32>
    %c0_11 = arith.constant 0 : index
    %c0_12 = arith.constant 0 : index
    %22 = vector.load %arg6[%c0_11, %c0_12] : memref<72x384xf32, #tpu.memory_space<vmem>>, vector<8x384xf32>
    tpu.vector_store %arg6[%c0_11, %c0_12], %21 {strides = array<i32>} : memref<72x384xf32, #tpu.memory_space<vmem>>, vector<8x384xf32>,
    %c0_13 = arith.constant 0 : index
    %c0_14 = arith.constant 0 : index
    %c1 = arith.constant 1 : index
    %23 = vector.load %arg1[%c0_13, %c0_14, %c1] : memref<2x8x512xf32, #tpu.memory_space<vmem>>, vector<1x8x384xf32>
    %24 = vector.shape_cast %23 : vector<1x8x384xf32> to vector<8x384xf32>
    %c8 = arith.constant 8 : index
    %c0_15 = arith.constant 0 : index
    %25 = vector.load %arg6[%c8, %c0_15] : memref<72x384xf32, #tpu.memory_space<vmem>>, vector<8x384xf32>
    tpu.vector_store %arg6[%c8, %c0_15], %24 {strides = array<i32>} : memref<72x384xf32, #tpu.memory_space<vmem>>, vector<8x384xf32>,
    %c0_16 = arith.constant 0 : index
    %c0_17 = arith.constant 0 : index
    %c2 = arith.constant 2 : index
    %26 = vector.load %arg1[%c0_16, %c0_17, %c2] : memref<2x8x512xf32, #tpu.memory_space<vmem>>, vector<1x8x384xf32>
    %27 = vector.shape_cast %26 : vector<1x8x384xf32> to vector<8x384xf32>
    %c16 = arith.constant 16 : index
    %c0_18 = arith.constant 0 : index
    %28 = vector.load %arg6[%c16, %c0_18] : memref<72x384xf32, #tpu.memory_space<vmem>>, vector<8x384xf32>
    tpu.vector_store %arg6[%c16, %c0_18], %27 {strides = array<i32>} : memref<72x384xf32, #tpu.memory_space<vmem>>, vector<8x384xf32>,
    %c0_19 = arith.constant 0 : index
    %c0_20 = arith.constant 0 : index
    %c18 = arith.constant 18 : index
    %29 = vector.load %arg1[%c0_19, %c0_20, %c18] : memref<2x8x512xf32, #tpu.memory_space<vmem>>, vector<1x8x384xf32>
    %30 = vector.shape_cast %29 : vector<1x8x384xf32> to vector<8x384xf32>
    %c24 = arith.constant 24 : index
    %c0_21 = arith.constant 0 : index
    %31 = vector.load %arg6[%c24, %c0_21] : memref<72x384xf32, #tpu.memory_space<vmem>>, vector<8x384xf32>
    tpu.vector_store %arg6[%c24, %c0_21], %30 {strides = array<i32>} : memref<72x384xf32, #tpu.memory_space<vmem>>, vector<8x384xf32>,
    %c0_22 = arith.constant 0 : index
    %c0_23 = arith.constant 0 : index
    %c19 = arith.constant 19 : index
    %32 = vector.load %arg1[%c0_22, %c0_23, %c19] : memref<2x8x512xf32, #tpu.memory_space<vmem>>, vector<1x8x384xf32>
    %33 = vector.shape_cast %32 : vector<1x8x384xf32> to vector<8x384xf32>
    %c32 = arith.constant 32 : index
    %c0_24 = arith.constant 0 : index
    %34 = vector.load %arg6[%c32, %c0_24] : memref<72x384xf32, #tpu.memory_space<vmem>>, vector<8x384xf32>
    tpu.vector_store %arg6[%c32, %c0_24], %33 {strides = array<i32>} : memref<72x384xf32, #tpu.memory_space<vmem>>, vector<8x384xf32>,
    %c0_25 = arith.constant 0 : index
    %c0_26 = arith.constant 0 : index
    %c20 = arith.constant 20 : index
    %35 = vector.load %arg1[%c0_25, %c0_26, %c20] : memref<2x8x512xf32, #tpu.memory_space<vmem>>, vector<1x8x384xf32>
    %36 = vector.shape_cast %35 : vector<1x8x384xf32> to vector<8x384xf32>
    %c40 = arith.constant 40 : index
    %c0_27 = arith.constant 0 : index
    %37 = vector.load %arg6[%c40, %c0_27] : memref<72x384xf32, #tpu.memory_space<vmem>>, vector<8x384xf32>
    tpu.vector_store %arg6[%c40, %c0_27], %36 {strides = array<i32>} : memref<72x384xf32, #tpu.memory_space<vmem>>, vector<8x384xf32>,
    %c0_28 = arith.constant 0 : index
    %c0_29 = arith.constant 0 : index
    %c36 = arith.constant 36 : index
    %38 = vector.load %arg1[%c0_28, %c0_29, %c36] : memref<2x8x512xf32, #tpu.memory_space<vmem>>, vector<1x8x384xf32>
    %39 = vector.shape_cast %38 : vector<1x8x384xf32> to vector<8x384xf32>
    %c48 = arith.constant 48 : index
    %c0_30 = arith.constant 0 : index
    %40 = vector.load %arg6[%c48, %c0_30] : memref<72x384xf32, #tpu.memory_space<vmem>>, vector<8x384xf32>
    tpu.vector_store %arg6[%c48, %c0_30], %39 {strides = array<i32>} : memref<72x384xf32, #tpu.memory_space<vmem>>, vector<8x384xf32>,
    %c0_31 = arith.constant 0 : index
    %c0_32 = arith.constant 0 : index
    %c37 = arith.constant 37 : index
    %41 = vector.load %arg1[%c0_31, %c0_32, %c37] : memref<2x8x512xf32, #tpu.memory_space<vmem>>, vector<1x8x384xf32>
    %42 = vector.shape_cast %41 : vector<1x8x384xf32> to vector<8x384xf32>
    %c56 = arith.constant 56 : index
    %c0_33 = arith.constant 0 : index
    %43 = vector.load %arg6[%c56, %c0_33] : memref<72x384xf32, #tpu.memory_space<vmem>>, vector<8x384xf32>
    tpu.vector_store %arg6[%c56, %c0_33], %42 {strides = array<i32>} : memref<72x384xf32, #tpu.memory_space<vmem>>, vector<8x384xf32>,
    %c0_34 = arith.constant 0 : index
    %c0_35 = arith.constant 0 : index
    %c38 = arith.constant 38 : index
    %44 = vector.load %arg1[%c0_34, %c0_35, %c38] : memref<2x8x512xf32, #tpu.memory_space<vmem>>, vector<1x8x384xf32>
    %45 = vector.shape_cast %44 : vector<1x8x384xf32> to vector<8x384xf32>
    %c64 = arith.constant 64 : index
    %c0_36 = arith.constant 0 : index
    %46 = vector.load %arg6[%c64, %c0_36] : memref<72x384xf32, #tpu.memory_space<vmem>>, vector<8x384xf32>
    tpu.vector_store %arg6[%c64, %c0_36], %45 {strides = array<i32>} : memref<72x384xf32, #tpu.memory_space<vmem>>, vector<8x384xf32>,
    %c0_37 = arith.constant 0 : index
    %c0_38 = arith.constant 0 : index
    %47 = vector.load %arg2[%c0_37, %c0_38] : memref<8x72xf32, #tpu.memory_space<vmem>>, vector<8x72xf32>
    %c0_39 = arith.constant 0 : index
    %c0_40 = arith.constant 0 : index
    %48 = vector.load %arg6[%c0_39, %c0_40] : memref<72x384xf32, #tpu.memory_space<vmem>>, vector<72x384xf32>
    %cst_41 = arith.constant dense<0.000000e+00> : vector<8x384xf32>
    %49 = tpu.matmul %47, %48, %cst_41 {dimension_numbers = #tpu.dot_dimension_numbers<[1], [0], [0], [1], [0, 0, 1, 1], [], []>} : vector<8x72xf32>, vector<72x384xf32>, vector<8x384xf32> -> vector<8x384xf32>
    %50 = vector.broadcast %17 : vector<1x384xf32> to vector<8x384xf32>
    %51 = arith.mulf %49, %50 : vector<8x384xf32>
    %cst_42 = arith.constant dense<0.000000e+00> : vector<8xf32>
    %52 = vector.multi_reduction <add>, %51, %cst_42 [1] : vector<8x384xf32> to vector<8xf32>
    %53 = vector.shape_cast %52 : vector<8xf32> to vector<8x1xf32>
    %54 = arith.mulf %51, %51 : vector<8x384xf32>
    %cst_43 = arith.constant dense<0.000000e+00> : vector<8xf32>
    %55 = vector.multi_reduction <add>, %54, %cst_43 [1] : vector<8x384xf32> to vector<8xf32>
    %56 = vector.shape_cast %55 : vector<8xf32> to vector<8x1xf32>
    %cst_44 = arith.constant 3.906250e-03 : f32
    %57 = vector.broadcast %cst_44 : f32 to vector<8x1xf32>
    %58 = arith.mulf %53, %57 : vector<8x1xf32>
    %cst_45 = arith.constant 3.906250e-03 : f32
    %59 = vector.broadcast %cst_45 : f32 to vector<8x1xf32>
    %60 = arith.mulf %56, %59 : vector<8x1xf32>
    %61 = arith.mulf %58, %58 : vector<8x1xf32>
    %62 = arith.subf %60, %61 : vector<8x1xf32>
    %cst_46 = arith.constant 0.000000e+00 : f32
    %63 = vector.broadcast %cst_46 : f32 to vector<8x1xf32>
    %64 = arith.maximumf %62, %63 : vector<8x1xf32>
    %65 = vector.broadcast %58 : vector<8x1xf32> to vector<8x384xf32>
    %66 = arith.subf %49, %65 : vector<8x384xf32>
    %cst_47 = arith.constant 9.99999974E-6 : f32
    %67 = vector.broadcast %cst_47 : f32 to vector<8x1xf32>
    %68 = arith.addf %64, %67 : vector<8x1xf32>
    %69 = math.rsqrt %68 : vector<8x1xf32>
    %70 = vector.broadcast %69 : vector<8x1xf32> to vector<8x384xf32>
    %71 = arith.mulf %66, %70 : vector<8x384xf32>
    %cst_48 = arith.constant 0.000000e+00 : f32
    %72 = vector.broadcast %cst_48 : f32 to vector<8x384xf32>
    %73 = arith.maximumf %71, %72 : vector<8x384xf32>
    %74 = vector.broadcast %17 : vector<1x384xf32> to vector<8x384xf32>
    %75 = arith.mulf %73, %74 : vector<8x384xf32>
    %c0_49 = arith.constant 0 : index
    %c19_50 = arith.constant 19 : index
    %76 = vector.load %arg5[%c0_49, %c19_50] : memref<8x512xf32, #tpu.memory_space<vmem>>, vector<8x384xf32>
    tpu.vector_store %arg5[%c0_49, %c19_50], %75 {strides = array<i32>} : memref<8x512xf32, #tpu.memory_space<vmem>>, vector<8x384xf32>,
    %c0_51 = arith.constant 0 : index
    %c0_52 = arith.constant 0 : index
    %77 = vector.load %arg5[%c0_51, %c0_52] : memref<8x512xf32, #tpu.memory_space<vmem>>, vector<8x384xf32>
    %c0_53 = arith.constant 0 : index
    %c0_54 = arith.constant 0 : index
    %78 = vector.load %arg6[%c0_53, %c0_54] : memref<72x384xf32, #tpu.memory_space<vmem>>, vector<8x384xf32>
    tpu.vector_store %arg6[%c0_53, %c0_54], %77 {strides = array<i32>} : memref<72x384xf32, #tpu.memory_space<vmem>>, vector<8x384xf32>,
    %c0_55 = arith.constant 0 : index
    %c1_56 = arith.constant 1 : index
    %79 = vector.load %arg5[%c0_55, %c1_56] : memref<8x512xf32, #tpu.memory_space<vmem>>, vector<8x384xf32>
    %c8_57 = arith.constant 8 : index
    %c0_58 = arith.constant 0 : index
    %80 = vector.load %arg6[%c8_57, %c0_58] : memref<72x384xf32, #tpu.memory_space<vmem>>, vector<8x384xf32>
    tpu.vector_store %arg6[%c8_57, %c0_58], %79 {strides = array<i32>} : memref<72x384xf32, #tpu.memory_space<vmem>>, vector<8x384xf32>,
    %c0_59 = arith.constant 0 : index
    %c2_60 = arith.constant 2 : index
    %81 = vector.load %arg5[%c0_59, %c2_60] : memref<8x512xf32, #tpu.memory_space<vmem>>, vector<8x384xf32>
    %c16_61 = arith.constant 16 : index
    %c0_62 = arith.constant 0 : index
    %82 = vector.load %arg6[%c16_61, %c0_62] : memref<72x384xf32, #tpu.memory_space<vmem>>, vector<8x384xf32>
    tpu.vector_store %arg6[%c16_61, %c0_62], %81 {strides = array<i32>} : memref<72x384xf32, #tpu.memory_space<vmem>>, vector<8x384xf32>,
    %c0_63 = arith.constant 0 : index
    %c18_64 = arith.constant 18 : index
    %83 = vector.load %arg5[%c0_63, %c18_64] : memref<8x512xf32, #tpu.memory_space<vmem>>, vector<8x384xf32>
    %c24_65 = arith.constant 24 : index
    %c0_66 = arith.constant 0 : index
    %84 = vector.load %arg6[%c24_65, %c0_66] : memref<72x384xf32, #tpu.memory_space<vmem>>, vector<8x384xf32>
    tpu.vector_store %arg6[%c24_65, %c0_66], %83 {strides = array<i32>} : memref<72x384xf32, #tpu.memory_space<vmem>>, vector<8x384xf32>,
    %c0_67 = arith.constant 0 : index
    %c19_68 = arith.constant 19 : index
    %85 = vector.load %arg5[%c0_67, %c19_68] : memref<8x512xf32, #tpu.memory_space<vmem>>, vector<8x384xf32>
    %c32_69 = arith.constant 32 : index
    %c0_70 = arith.constant 0 : index
    %86 = vector.load %arg6[%c32_69, %c0_70] : memref<72x384xf32, #tpu.memory_space<vmem>>, vector<8x384xf32>
    tpu.vector_store %arg6[%c32_69, %c0_70], %85 {strides = array<i32>} : memref<72x384xf32, #tpu.memory_space<vmem>>, vector<8x384xf32>,
    %c0_71 = arith.constant 0 : index
    %c20_72 = arith.constant 20 : index
    %87 = vector.load %arg5[%c0_71, %c20_72] : memref<8x512xf32, #tpu.memory_space<vmem>>, vector<8x384xf32>
    %c40_73 = arith.constant 40 : index
    %c0_74 = arith.constant 0 : index
    %88 = vector.load %arg6[%c40_73, %c0_74] : memref<72x384xf32, #tpu.memory_space<vmem>>, vector<8x384xf32>
    tpu.vector_store %arg6[%c40_73, %c0_74], %87 {strides = array<i32>} : memref<72x384xf32, #tpu.memory_space<vmem>>, vector<8x384xf32>,
    %c0_75 = arith.constant 0 : index
    %c36_76 = arith.constant 36 : index
    %89 = vector.load %arg5[%c0_75, %c36_76] : memref<8x512xf32, #tpu.memory_space<vmem>>, vector<8x384xf32>
    %c48_77 = arith.constant 48 : index
    %c0_78 = arith.constant 0 : index
    %90 = vector.load %arg6[%c48_77, %c0_78] : memref<72x384xf32, #tpu.memory_space<vmem>>, vector<8x384xf32>
    tpu.vector_store %arg6[%c48_77, %c0_78], %89 {strides = array<i32>} : memref<72x384xf32, #tpu.memory_space<vmem>>, vector<8x384xf32>,
    %c0_79 = arith.constant 0 : index
    %c37_80 = arith.constant 37 : index
    %91 = vector.load %arg5[%c0_79, %c37_80] : memref<8x512xf32, #tpu.memory_space<vmem>>, vector<8x384xf32>
    %c56_81 = arith.constant 56 : index
    %c0_82 = arith.constant 0 : index
    %92 = vector.load %arg6[%c56_81, %c0_82] : memref<72x384xf32, #tpu.memory_space<vmem>>, vector<8x384xf32>
    tpu.vector_store %arg6[%c56_81, %c0_82], %91 {strides = array<i32>} : memref<72x384xf32, #tpu.memory_space<vmem>>, vector<8x384xf32>,
    %c0_83 = arith.constant 0 : index
    %c38_84 = arith.constant 38 : index
    %93 = vector.load %arg5[%c0_83, %c38_84] : memref<8x512xf32, #tpu.memory_space<vmem>>, vector<8x384xf32>
    %c64_85 = arith.constant 64 : index
    %c0_86 = arith.constant 0 : index
    %94 = vector.load %arg6[%c64_85, %c0_86] : memref<72x384xf32, #tpu.memory_space<vmem>>, vector<8x384xf32>
    tpu.vector_store %arg6[%c64_85, %c0_86], %93 {strides = array<i32>} : memref<72x384xf32, #tpu.memory_space<vmem>>, vector<8x384xf32>,
    %c0_87 = arith.constant 0 : index
    %c0_88 = arith.constant 0 : index
    %95 = vector.load %arg3[%c0_87, %c0_88] : memref<8x72xf32, #tpu.memory_space<vmem>>, vector<8x72xf32>
    %c0_89 = arith.constant 0 : index
    %c0_90 = arith.constant 0 : index
    %96 = vector.load %arg6[%c0_89, %c0_90] : memref<72x384xf32, #tpu.memory_space<vmem>>, vector<72x384xf32>
    %cst_91 = arith.constant dense<0.000000e+00> : vector<8x384xf32>
    %97 = tpu.matmul %95, %96, %cst_91 {dimension_numbers = #tpu.dot_dimension_numbers<[1], [0], [0], [1], [0, 0, 1, 1], [], []>} : vector<8x72xf32>, vector<72x384xf32>, vector<8x384xf32> -> vector<8x384xf32>
    %98 = vector.broadcast %17 : vector<1x384xf32> to vector<8x384xf32>
    %99 = arith.mulf %97, %98 : vector<8x384xf32>
    %cst_92 = arith.constant dense<0.000000e+00> : vector<8xf32>
    %100 = vector.multi_reduction <add>, %99, %cst_92 [1] : vector<8x384xf32> to vector<8xf32>
    %101 = vector.shape_cast %100 : vector<8xf32> to vector<8x1xf32>
    %102 = arith.mulf %99, %99 : vector<8x384xf32>
    %cst_93 = arith.constant dense<0.000000e+00> : vector<8xf32>
    %103 = vector.multi_reduction <add>, %102, %cst_93 [1] : vector<8x384xf32> to vector<8xf32>
    %104 = vector.shape_cast %103 : vector<8xf32> to vector<8x1xf32>
    %cst_94 = arith.constant 3.906250e-03 : f32
    %105 = vector.broadcast %cst_94 : f32 to vector<8x1xf32>
    %106 = arith.mulf %101, %105 : vector<8x1xf32>
    %cst_95 = arith.constant 3.906250e-03 : f32
    %107 = vector.broadcast %cst_95 : f32 to vector<8x1xf32>
    %108 = arith.mulf %104, %107 : vector<8x1xf32>
    %109 = arith.mulf %106, %106 : vector<8x1xf32>
    %110 = arith.subf %108, %109 : vector<8x1xf32>
    %cst_96 = arith.constant 0.000000e+00 : f32
    %111 = vector.broadcast %cst_96 : f32 to vector<8x1xf32>
    %112 = arith.maximumf %110, %111 : vector<8x1xf32>
    %113 = vector.broadcast %106 : vector<8x1xf32> to vector<8x384xf32>
    %114 = arith.subf %97, %113 : vector<8x384xf32>
    %cst_97 = arith.constant 9.99999974E-6 : f32
    %115 = vector.broadcast %cst_97 : f32 to vector<8x1xf32>
    %116 = arith.addf %112, %115 : vector<8x1xf32>
    %117 = math.rsqrt %116 : vector<8x1xf32>
    %118 = vector.broadcast %117 : vector<8x1xf32> to vector<8x384xf32>
    %119 = arith.mulf %114, %118 : vector<8x384xf32>
    %c0_98 = arith.constant 0 : index
    %c0_99 = arith.constant 0 : index
    %c19_100 = arith.constant 19 : index
    %120 = vector.load %arg1[%c0_98, %c0_99, %c19_100] : memref<2x8x512xf32, #tpu.memory_space<vmem>>, vector<1x8x384xf32>
    %121 = vector.shape_cast %120 : vector<1x8x384xf32> to vector<8x384xf32>
    %122 = arith.addf %119, %121 : vector<8x384xf32>
    %c0_101 = arith.constant 0 : index
    %c0_102 = arith.constant 0 : index
    %c0_103 = arith.constant 0 : index
    %123 = vector.load %arg4[%c0_101, %c0_102, %c0_103] : memref<2x8x384xf32, #tpu.memory_space<vmem>>, vector<1x8x384xf32>
    %124 = vector.shape_cast %123 : vector<1x8x384xf32> to vector<8x384xf32>
    %125 = vector.shape_cast %122 : vector<8x384xf32> to vector<1x8x384xf32>
    tpu.vector_store %arg4[%c0_101, %c0_102, %c0_103], %125 {strides = array<i32>} : memref<2x8x384xf32, #tpu.memory_space<vmem>>, vector<1x8x384xf32>,
    %c1_104 = arith.constant 1 : index
    %c0_105 = arith.constant 0 : index
    %c0_106 = arith.constant 0 : index
    %126 = vector.load %arg1[%c1_104, %c0_105, %c0_106] : memref<2x8x512xf32, #tpu.memory_space<vmem>>, vector<1x8x384xf32>
    %127 = vector.shape_cast %126 : vector<1x8x384xf32> to vector<8x384xf32>
    %c0_107 = arith.constant 0 : index
    %c0_108 = arith.constant 0 : index
    %128 = vector.load %arg6[%c0_107, %c0_108] : memref<72x384xf32, #tpu.memory_space<vmem>>, vector<8x384xf32>
    tpu.vector_store %arg6[%c0_107, %c0_108], %127 {strides = array<i32>} : memref<72x384xf32, #tpu.memory_space<vmem>>, vector<8x384xf32>,
    %c1_109 = arith.constant 1 : index
    %c0_110 = arith.constant 0 : index
    %c1_111 = arith.constant 1 : index
    %129 = vector.load %arg1[%c1_109, %c0_110, %c1_111] : memref<2x8x512xf32, #tpu.memory_space<vmem>>, vector<1x8x384xf32>
    %130 = vector.shape_cast %129 : vector<1x8x384xf32> to vector<8x384xf32>
    %c8_112 = arith.constant 8 : index
    %c0_113 = arith.constant 0 : index
    %131 = vector.load %arg6[%c8_112, %c0_113] : memref<72x384xf32, #tpu.memory_space<vmem>>, vector<8x384xf32>
    tpu.vector_store %arg6[%c8_112, %c0_113], %130 {strides = array<i32>} : memref<72x384xf32, #tpu.memory_space<vmem>>, vector<8x384xf32>,
    %c1_114 = arith.constant 1 : index
    %c0_115 = arith.constant 0 : index
    %c2_116 = arith.constant 2 : index
    %132 = vector.load %arg1[%c1_114, %c0_115, %c2_116] : memref<2x8x512xf32, #tpu.memory_space<vmem>>, vector<1x8x384xf32>
    %133 = vector.shape_cast %132 : vector<1x8x384xf32> to vector<8x384xf32>
    %c16_117 = arith.constant 16 : index
    %c0_118 = arith.constant 0 : index
    %134 = vector.load %arg6[%c16_117, %c0_118] : memref<72x384xf32, #tpu.memory_space<vmem>>, vector<8x384xf32>
    tpu.vector_store %arg6[%c16_117, %c0_118], %133 {strides = array<i32>} : memref<72x384xf32, #tpu.memory_space<vmem>>, vector<8x384xf32>,
    %c1_119 = arith.constant 1 : index
    %c0_120 = arith.constant 0 : index
    %c18_121 = arith.constant 18 : index
    %135 = vector.load %arg1[%c1_119, %c0_120, %c18_121] : memref<2x8x512xf32, #tpu.memory_space<vmem>>, vector<1x8x384xf32>
    %136 = vector.shape_cast %135 : vector<1x8x384xf32> to vector<8x384xf32>
    %c24_122 = arith.constant 24 : index
    %c0_123 = arith.constant 0 : index
    %137 = vector.load %arg6[%c24_122, %c0_123] : memref<72x384xf32, #tpu.memory_space<vmem>>, vector<8x384xf32>
    tpu.vector_store %arg6[%c24_122, %c0_123], %136 {strides = array<i32>} : memref<72x384xf32, #tpu.memory_space<vmem>>, vector<8x384xf32>,
    %c1_124 = arith.constant 1 : index
    %c0_125 = arith.constant 0 : index
    %c19_126 = arith.constant 19 : index
    %138 = vector.load %arg1[%c1_124, %c0_125, %c19_126] : memref<2x8x512xf32, #tpu.memory_space<vmem>>, vector<1x8x384xf32>
    %139 = vector.shape_cast %138 : vector<1x8x384xf32> to vector<8x384xf32>
    %c32_127 = arith.constant 32 : index
    %c0_128 = arith.constant 0 : index
    %140 = vector.load %arg6[%c32_127, %c0_128] : memref<72x384xf32, #tpu.memory_space<vmem>>, vector<8x384xf32>
    tpu.vector_store %arg6[%c32_127, %c0_128], %139 {strides = array<i32>} : memref<72x384xf32, #tpu.memory_space<vmem>>, vector<8x384xf32>,
    %c1_129 = arith.constant 1 : index
    %c0_130 = arith.constant 0 : index
    %c20_131 = arith.constant 20 : index
    %141 = vector.load %arg1[%c1_129, %c0_130, %c20_131] : memref<2x8x512xf32, #tpu.memory_space<vmem>>, vector<1x8x384xf32>
    %142 = vector.shape_cast %141 : vector<1x8x384xf32> to vector<8x384xf32>
    %c40_132 = arith.constant 40 : index
    %c0_133 = arith.constant 0 : index
    %143 = vector.load %arg6[%c40_132, %c0_133] : memref<72x384xf32, #tpu.memory_space<vmem>>, vector<8x384xf32>
    tpu.vector_store %arg6[%c40_132, %c0_133], %142 {strides = array<i32>} : memref<72x384xf32, #tpu.memory_space<vmem>>, vector<8x384xf32>,
    %c1_134 = arith.constant 1 : index
    %c0_135 = arith.constant 0 : index
    %c36_136 = arith.constant 36 : index
    %144 = vector.load %arg1[%c1_134, %c0_135, %c36_136] : memref<2x8x512xf32, #tpu.memory_space<vmem>>, vector<1x8x384xf32>
    %145 = vector.shape_cast %144 : vector<1x8x384xf32> to vector<8x384xf32>
    %c48_137 = arith.constant 48 : index
    %c0_138 = arith.constant 0 : index
    %146 = vector.load %arg6[%c48_137, %c0_138] : memref<72x384xf32, #tpu.memory_space<vmem>>, vector<8x384xf32>
    tpu.vector_store %arg6[%c48_137, %c0_138], %145 {strides = array<i32>} : memref<72x384xf32, #tpu.memory_space<vmem>>, vector<8x384xf32>,
    %c1_139 = arith.constant 1 : index
    %c0_140 = arith.constant 0 : index
    %c37_141 = arith.constant 37 : index
    %147 = vector.load %arg1[%c1_139, %c0_140, %c37_141] : memref<2x8x512xf32, #tpu.memory_space<vmem>>, vector<1x8x384xf32>
    %148 = vector.shape_cast %147 : vector<1x8x384xf32> to vector<8x384xf32>
    %c56_142 = arith.constant 56 : index
    %c0_143 = arith.constant 0 : index
    %149 = vector.load %arg6[%c56_142, %c0_143] : memref<72x384xf32, #tpu.memory_space<vmem>>, vector<8x384xf32>
    tpu.vector_store %arg6[%c56_142, %c0_143], %148 {strides = array<i32>} : memref<72x384xf32, #tpu.memory_space<vmem>>, vector<8x384xf32>,
    %c1_144 = arith.constant 1 : index
    %c0_145 = arith.constant 0 : index
    %c38_146 = arith.constant 38 : index
    %150 = vector.load %arg1[%c1_144, %c0_145, %c38_146] : memref<2x8x512xf32, #tpu.memory_space<vmem>>, vector<1x8x384xf32>
    %151 = vector.shape_cast %150 : vector<1x8x384xf32> to vector<8x384xf32>
    %c64_147 = arith.constant 64 : index
    %c0_148 = arith.constant 0 : index
    %152 = vector.load %arg6[%c64_147, %c0_148] : memref<72x384xf32, #tpu.memory_space<vmem>>, vector<8x384xf32>
    tpu.vector_store %arg6[%c64_147, %c0_148], %151 {strides = array<i32>} : memref<72x384xf32, #tpu.memory_space<vmem>>, vector<8x384xf32>,
    %c0_149 = arith.constant 0 : index
    %c0_150 = arith.constant 0 : index
    %153 = vector.load %arg2[%c0_149, %c0_150] : memref<8x72xf32, #tpu.memory_space<vmem>>, vector<8x72xf32>
    %c0_151 = arith.constant 0 : index
    %c0_152 = arith.constant 0 : index
    %154 = vector.load %arg6[%c0_151, %c0_152] : memref<72x384xf32, #tpu.memory_space<vmem>>, vector<72x384xf32>
    %cst_153 = arith.constant dense<0.000000e+00> : vector<8x384xf32>
    %155 = tpu.matmul %153, %154, %cst_153 {dimension_numbers = #tpu.dot_dimension_numbers<[1], [0], [0], [1], [0, 0, 1, 1], [], []>} : vector<8x72xf32>, vector<72x384xf32>, vector<8x384xf32> -> vector<8x384xf32>
    %156 = vector.broadcast %17 : vector<1x384xf32> to vector<8x384xf32>
    %157 = arith.mulf %155, %156 : vector<8x384xf32>
    %cst_154 = arith.constant dense<0.000000e+00> : vector<8xf32>
    %158 = vector.multi_reduction <add>, %157, %cst_154 [1] : vector<8x384xf32> to vector<8xf32>
    %159 = vector.shape_cast %158 : vector<8xf32> to vector<8x1xf32>
    %160 = arith.mulf %157, %157 : vector<8x384xf32>
    %cst_155 = arith.constant dense<0.000000e+00> : vector<8xf32>
    %161 = vector.multi_reduction <add>, %160, %cst_155 [1] : vector<8x384xf32> to vector<8xf32>
    %162 = vector.shape_cast %161 : vector<8xf32> to vector<8x1xf32>
    %cst_156 = arith.constant 3.906250e-03 : f32
    %163 = vector.broadcast %cst_156 : f32 to vector<8x1xf32>
    %164 = arith.mulf %159, %163 : vector<8x1xf32>
    %cst_157 = arith.constant 3.906250e-03 : f32
    %165 = vector.broadcast %cst_157 : f32 to vector<8x1xf32>
    %166 = arith.mulf %162, %165 : vector<8x1xf32>
    %167 = arith.mulf %164, %164 : vector<8x1xf32>
    %168 = arith.subf %166, %167 : vector<8x1xf32>
    %cst_158 = arith.constant 0.000000e+00 : f32
    %169 = vector.broadcast %cst_158 : f32 to vector<8x1xf32>
    %170 = arith.maximumf %168, %169 : vector<8x1xf32>
    %171 = vector.broadcast %164 : vector<8x1xf32> to vector<8x384xf32>
    %172 = arith.subf %155, %171 : vector<8x384xf32>
    %cst_159 = arith.constant 9.99999974E-6 : f32
    %173 = vector.broadcast %cst_159 : f32 to vector<8x1xf32>
    %174 = arith.addf %170, %173 : vector<8x1xf32>
    %175 = math.rsqrt %174 : vector<8x1xf32>
    %176 = vector.broadcast %175 : vector<8x1xf32> to vector<8x384xf32>
    %177 = arith.mulf %172, %176 : vector<8x384xf32>
    %cst_160 = arith.constant 0.000000e+00 : f32
    %178 = vector.broadcast %cst_160 : f32 to vector<8x384xf32>
    %179 = arith.maximumf %177, %178 : vector<8x384xf32>
    %180 = vector.broadcast %17 : vector<1x384xf32> to vector<8x384xf32>
    %181 = arith.mulf %179, %180 : vector<8x384xf32>
    %c0_161 = arith.constant 0 : index
    %c19_162 = arith.constant 19 : index
    %182 = vector.load %arg5[%c0_161, %c19_162] : memref<8x512xf32, #tpu.memory_space<vmem>>, vector<8x384xf32>
    tpu.vector_store %arg5[%c0_161, %c19_162], %181 {strides = array<i32>} : memref<8x512xf32, #tpu.memory_space<vmem>>, vector<8x384xf32>,
    %c0_163 = arith.constant 0 : index
    %c0_164 = arith.constant 0 : index
    %183 = vector.load %arg5[%c0_163, %c0_164] : memref<8x512xf32, #tpu.memory_space<vmem>>, vector<8x384xf32>
    %c0_165 = arith.constant 0 : index
    %c0_166 = arith.constant 0 : index
    %184 = vector.load %arg6[%c0_165, %c0_166] : memref<72x384xf32, #tpu.memory_space<vmem>>, vector<8x384xf32>
    tpu.vector_store %arg6[%c0_165, %c0_166], %183 {strides = array<i32>} : memref<72x384xf32, #tpu.memory_space<vmem>>, vector<8x384xf32>,
    %c0_167 = arith.constant 0 : index
    %c1_168 = arith.constant 1 : index
    %185 = vector.load %arg5[%c0_167, %c1_168] : memref<8x512xf32, #tpu.memory_space<vmem>>, vector<8x384xf32>
    %c8_169 = arith.constant 8 : index
    %c0_170 = arith.constant 0 : index
    %186 = vector.load %arg6[%c8_169, %c0_170] : memref<72x384xf32, #tpu.memory_space<vmem>>, vector<8x384xf32>
    tpu.vector_store %arg6[%c8_169, %c0_170], %185 {strides = array<i32>} : memref<72x384xf32, #tpu.memory_space<vmem>>, vector<8x384xf32>,
    %c0_171 = arith.constant 0 : index
    %c2_172 = arith.constant 2 : index
    %187 = vector.load %arg5[%c0_171, %c2_172] : memref<8x512xf32, #tpu.memory_space<vmem>>, vector<8x384xf32>
    %c16_173 = arith.constant 16 : index
    %c0_174 = arith.constant 0 : index
    %188 = vector.load %arg6[%c16_173, %c0_174] : memref<72x384xf32, #tpu.memory_space<vmem>>, vector<8x384xf32>
    tpu.vector_store %arg6[%c16_173, %c0_174], %187 {strides = array<i32>} : memref<72x384xf32, #tpu.memory_space<vmem>>, vector<8x384xf32>,
    %c0_175 = arith.constant 0 : index
    %c18_176 = arith.constant 18 : index
    %189 = vector.load %arg5[%c0_175, %c18_176] : memref<8x512xf32, #tpu.memory_space<vmem>>, vector<8x384xf32>
    %c24_177 = arith.constant 24 : index
    %c0_178 = arith.constant 0 : index
    %190 = vector.load %arg6[%c24_177, %c0_178] : memref<72x384xf32, #tpu.memory_space<vmem>>, vector<8x384xf32>
    tpu.vector_store %arg6[%c24_177, %c0_178], %189 {strides = array<i32>} : memref<72x384xf32, #tpu.memory_space<vmem>>, vector<8x384xf32>,
    %c0_179 = arith.constant 0 : index
    %c19_180 = arith.constant 19 : index
    %191 = vector.load %arg5[%c0_179, %c19_180] : memref<8x512xf32, #tpu.memory_space<vmem>>, vector<8x384xf32>
    %c32_181 = arith.constant 32 : index
    %c0_182 = arith.constant 0 : index
    %192 = vector.load %arg6[%c32_181, %c0_182] : memref<72x384xf32, #tpu.memory_space<vmem>>, vector<8x384xf32>
    tpu.vector_store %arg6[%c32_181, %c0_182], %191 {strides = array<i32>} : memref<72x384xf32, #tpu.memory_space<vmem>>, vector<8x384xf32>,
    %c0_183 = arith.constant 0 : index
    %c20_184 = arith.constant 20 : index
    %193 = vector.load %arg5[%c0_183, %c20_184] : memref<8x512xf32, #tpu.memory_space<vmem>>, vector<8x384xf32>
    %c40_185 = arith.constant 40 : index
    %c0_186 = arith.constant 0 : index
    %194 = vector.load %arg6[%c40_185, %c0_186] : memref<72x384xf32, #tpu.memory_space<vmem>>, vector<8x384xf32>
    tpu.vector_store %arg6[%c40_185, %c0_186], %193 {strides = array<i32>} : memref<72x384xf32, #tpu.memory_space<vmem>>, vector<8x384xf32>,
    %c0_187 = arith.constant 0 : index
    %c36_188 = arith.constant 36 : index
    %195 = vector.load %arg5[%c0_187, %c36_188] : memref<8x512xf32, #tpu.memory_space<vmem>>, vector<8x384xf32>
    %c48_189 = arith.constant 48 : index
    %c0_190 = arith.constant 0 : index
    %196 = vector.load %arg6[%c48_189, %c0_190] : memref<72x384xf32, #tpu.memory_space<vmem>>, vector<8x384xf32>
    tpu.vector_store %arg6[%c48_189, %c0_190], %195 {strides = array<i32>} : memref<72x384xf32, #tpu.memory_space<vmem>>, vector<8x384xf32>,
    %c0_191 = arith.constant 0 : index
    %c37_192 = arith.constant 37 : index
    %197 = vector.load %arg5[%c0_191, %c37_192] : memref<8x512xf32, #tpu.memory_space<vmem>>, vector<8x384xf32>
    %c56_193 = arith.constant 56 : index
    %c0_194 = arith.constant 0 : index
    %198 = vector.load %arg6[%c56_193, %c0_194] : memref<72x384xf32, #tpu.memory_space<vmem>>, vector<8x384xf32>
    tpu.vector_store %arg6[%c56_193, %c0_194], %197 {strides = array<i32>} : memref<72x384xf32, #tpu.memory_space<vmem>>, vector<8x384xf32>,
    %c0_195 = arith.constant 0 : index
    %c38_196 = arith.constant 38 : index
    %199 = vector.load %arg5[%c0_195, %c38_196] : memref<8x512xf32, #tpu.memory_space<vmem>>, vector<8x384xf32>
    %c64_197 = arith.constant 64 : index
    %c0_198 = arith.constant 0 : index
    %200 = vector.load %arg6[%c64_197, %c0_198] : memref<72x384xf32, #tpu.memory_space<vmem>>, vector<8x384xf32>
    tpu.vector_store %arg6[%c64_197, %c0_198], %199 {strides = array<i32>} : memref<72x384xf32, #tpu.memory_space<vmem>>, vector<8x384xf32>,
    %c0_199 = arith.constant 0 : index
    %c0_200 = arith.constant 0 : index
    %201 = vector.load %arg3[%c0_199, %c0_200] : memref<8x72xf32, #tpu.memory_space<vmem>>, vector<8x72xf32>
    %c0_201 = arith.constant 0 : index
    %c0_202 = arith.constant 0 : index
    %202 = vector.load %arg6[%c0_201, %c0_202] : memref<72x384xf32, #tpu.memory_space<vmem>>, vector<72x384xf32>
    %cst_203 = arith.constant dense<0.000000e+00> : vector<8x384xf32>
    %203 = tpu.matmul %201, %202, %cst_203 {dimension_numbers = #tpu.dot_dimension_numbers<[1], [0], [0], [1], [0, 0, 1, 1], [], []>} : vector<8x72xf32>, vector<72x384xf32>, vector<8x384xf32> -> vector<8x384xf32>
    %204 = vector.broadcast %17 : vector<1x384xf32> to vector<8x384xf32>
    %205 = arith.mulf %203, %204 : vector<8x384xf32>
    %cst_204 = arith.constant dense<0.000000e+00> : vector<8xf32>
    %206 = vector.multi_reduction <add>, %205, %cst_204 [1] : vector<8x384xf32> to vector<8xf32>
    %207 = vector.shape_cast %206 : vector<8xf32> to vector<8x1xf32>
    %208 = arith.mulf %205, %205 : vector<8x384xf32>
    %cst_205 = arith.constant dense<0.000000e+00> : vector<8xf32>
    %209 = vector.multi_reduction <add>, %208, %cst_205 [1] : vector<8x384xf32> to vector<8xf32>
    %210 = vector.shape_cast %209 : vector<8xf32> to vector<8x1xf32>
    %cst_206 = arith.constant 3.906250e-03 : f32
    %211 = vector.broadcast %cst_206 : f32 to vector<8x1xf32>
    %212 = arith.mulf %207, %211 : vector<8x1xf32>
    %cst_207 = arith.constant 3.906250e-03 : f32
    %213 = vector.broadcast %cst_207 : f32 to vector<8x1xf32>
    %214 = arith.mulf %210, %213 : vector<8x1xf32>
    %215 = arith.mulf %212, %212 : vector<8x1xf32>
    %216 = arith.subf %214, %215 : vector<8x1xf32>
    %cst_208 = arith.constant 0.000000e+00 : f32
    %217 = vector.broadcast %cst_208 : f32 to vector<8x1xf32>
    %218 = arith.maximumf %216, %217 : vector<8x1xf32>
    %219 = vector.broadcast %212 : vector<8x1xf32> to vector<8x384xf32>
    %220 = arith.subf %203, %219 : vector<8x384xf32>
    %cst_209 = arith.constant 9.99999974E-6 : f32
    %221 = vector.broadcast %cst_209 : f32 to vector<8x1xf32>
    %222 = arith.addf %218, %221 : vector<8x1xf32>
    %223 = math.rsqrt %222 : vector<8x1xf32>
    %224 = vector.broadcast %223 : vector<8x1xf32> to vector<8x384xf32>
    %225 = arith.mulf %220, %224 : vector<8x384xf32>
    %c1_210 = arith.constant 1 : index
    %c0_211 = arith.constant 0 : index
    %c19_212 = arith.constant 19 : index
    %226 = vector.load %arg1[%c1_210, %c0_211, %c19_212] : memref<2x8x512xf32, #tpu.memory_space<vmem>>, vector<1x8x384xf32>
    %227 = vector.shape_cast %226 : vector<1x8x384xf32> to vector<8x384xf32>
    %228 = arith.addf %225, %227 : vector<8x384xf32>
    %c1_213 = arith.constant 1 : index
    %c0_214 = arith.constant 0 : index
    %c0_215 = arith.constant 0 : index
    %229 = vector.load %arg4[%c1_213, %c0_214, %c0_215] : memref<2x8x384xf32, #tpu.memory_space<vmem>>, vector<1x8x384xf32>
    %230 = vector.shape_cast %229 : vector<1x8x384xf32> to vector<8x384xf32>
    %231 = vector.shape_cast %228 : vector<8x384xf32> to vector<1x8x384xf32>
    tpu.vector_store %arg4[%c1_213, %c0_214, %c0_215], %231 {strides = array<i32>} : memref<2x8x384xf32, #tpu.memory_space<vmem>>, vector<1x8x384xf32>,
    return
  }
  func.func @transform_0(%arg0: i32) -> (i32, i32, i32) {
    %c0_i32 = arith.constant 0 : i32
    %c0_i32_0 = arith.constant 0 : i32
    %c0_i32_1 = arith.constant 0 : i32
    return %arg0, %c0_i32, %c0_i32_0 : i32, i32, i32
  }
  func.func @transform_1(%arg0: i32) -> (i32, i32) {
    %c0_i32 = arith.constant 0 : i32
    %c0_i32_0 = arith.constant 0 : i32
    %c0_i32_1 = arith.constant 0 : i32
    return %c0_i32, %c0_i32_0 : i32, i32
  }
  func.func @transform_2(%arg0: i32) -> (i32, i32) {
    %c0_i32 = arith.constant 0 : i32
    %c0_i32_0 = arith.constant 0 : i32
    %c0_i32_1 = arith.constant 0 : i32
    return %c0_i32, %c0_i32_0 : i32, i32
  }
  func.func @transform_3(%arg0: i32) -> (i32, i32, i32) {
    %c0_i32 = arith.constant 0 : i32
    %c0_i32_0 = arith.constant 0 : i32
    %c0_i32_1 = arith.constant 0 : i32
    return %arg0, %c0_i32, %c0_i32_0 : i32, i32, i32
  }
}

</mosaic_0001>

<bundles_post_ra>
// kernel: resblock_forward.1
= control target key start
LH: loop header
LB: loop body
LE: loop exit
PB: predicated region body
PF: predicated region fallthrough
CT: control target
= control target key end

     0   :  { %v2381_v3 = vmov 0.0|0.0   ;;  %s2382_s20 = smov 126   ;;  %s2383_s21 = smov 127   ;;  %v2387_v7 = vmov 0.0   ;;  %vm2899_vm0 = vmmov 0   ;;  %vm74_vm1 = vcmask 1039360   ;;  %s2895_s0 = inlined_call_operand.vmem [shape: f32[2,8,512], index: 0, kind: input, shape index: {}]   ;;  %s2896_s1 = inlined_call_operand.vmem [shape: f32[8,72], index: 1, kind: input, shape index: {}]   ;;  %s2897_s2 = inlined_call_operand.vmem [shape: f32[8,72], index: 2, kind: input, shape index: {}]   ;;  %s2898_s3 = inlined_call_operand.vmem [shape: f32[2,8,384], index: 3, kind: output, shape index: {}]  }
   0x1   :  { %v85_v0 = vld [vmem:[%s2895_s0 + $0x8] sm:$0xff]  ;;  %v2419_v1 = vld [vmem:[%s2895_s0 + $0x10] sm:$0xff]  ;;  %v2424_v2 = vld [vmem:[%s2895_s0] sm:$0xff]  ;;  %1985 = vmatprep.subr.bf16.mxu1 %v2381_v3  ;;  %s2384_s22 = smov 110   ;;  %s2385_s23 = smov 108   ;;  %48 = vst [vmem:[#allocation2] sm:$0xff] %v2387_v7  ;;  %362 = vmatprep.mubr.f32.mxu0 %v2387_v7 }
   0x2   :  { %v2103_v4 = vpack.i.bf16 %v2419_v1, %v85_v0  ;;  %v61_v5 = vld [vmem:[%s2895_s0 + $0x18] sm:$0xff]  ;;  %s2386_s24 = smov 109   ;;  %51 = vst [vmem:[#allocation2 + $0x18] sm:$0xff] %v2387_v7  ;;  %s2388_s25 = smov 91   ;;  %1903 = vmatprep.mubr.msk.f32.mxu1 %vm2899_vm0, %v2387_v7  ;;  %vm100_vm2 = vcmask 1031168   ;;  %vm126_vm3 = vcmask 900096  }
   0x3   :  { %v2098_v6 = vpack.i.bf16 %v61_v5, %v2424_v2  ;;  %s2389_s26 = smov 92   ;;  %s2391_s27 = smov 90   ;;  %vm152_vm4 = vcmask 891904   ;;  %vm178_vm5 = vcmask 883712   ;;  %vm204_vm6 = vcmask 752640  }
   0x4   :  { %2104 = vrot.lane.b32.xlu1 %v2103_v4, %s2382_s20  ;;  %2094 = vrot.lane.b32.xlu0 %v2103_v4, %s2383_s21  ;;  %vm230_vm7 = vcmask 744448   ;;  %vm2902_vm8 = vcmask 736256   ;;  %vm2901_vm9 = vcmask 588800   ;;  %s2392_s6 = smov 19  }
   0x8   :  { %2109 = vrot.lane.b32.xlu1 %v2103_v4, %s2384_s22  ;;  %2099 = vrot.lane.b32.xlu0 %v2098_v6, %s2383_s21 }
   0xc   :  { %2119 = vrot.lane.b32.xlu1 %v2098_v6, %s2384_s22  ;;  %2114 = vrot.lane.b32.xlu0 %v2098_v6, %s2382_s20 }
  0x10   :  { %2129 = vrot.lane.b32.xlu1 %v2103_v4, %s2385_s23  ;;  %2124 = vrot.lane.b32.xlu0 %v2103_v4, %s2386_s24 }
  0x14   :  { %2139 = vrot.lane.b32.xlu1 %v2098_v6, %s2385_s23  ;;  %2134 = vrot.lane.b32.xlu0 %v2098_v6, %s2386_s24 }
  0x18   :  { %2149 = vrot.lane.b32.xlu1 %v2103_v4, %s2388_s25  ;;  %2144 = vrot.lane.b32.xlu0 %v2103_v4, %s2389_s26 }
  0x1c   :  { %2159 = vrot.lane.b32.xlu1 %v2098_v6, %s2388_s25  ;;  %2154 = vrot.lane.b32.xlu0 %v2098_v6, %s2389_s26 }
  0x20   :  { %252 = vrot.lane.b32.xlu1 %v2419_v1, %s2391_s27  ;;  %250 = vrot.lane.b32.xlu0 %v85_v0, %s2391_s27 }
  0x24   :  { %254 = vrot.lane.b32.xlu1 %v61_v5, %s2391_s27  ;;  %248 = vrot.lane.b32.xlu0 %v2424_v2, %s2391_s27 }
  0x76   :  { %v2105_v8 = vpop.permute.xlu1 %2104  ;;  %v2095_v9 = vpop.permute.xlu0 %2094 }
  0x77   :  { %v2097_v10 = vunpack.i.h.bf16 %v2095_v9  ;;  %v2096_v11 = vunpack.i.l.bf16 %v2095_v9  ;;  %v2107_v12 = vunpack.i.h.bf16 %v2105_v8  ;;  %v2106_v13 = vunpack.i.l.bf16 %v2105_v8 }
  0x79   :  { %v76_v14 = vsel %vm74_vm1, %v2096_v11, %v2097_v10  ;;  %v102_v24 = vsel %vm100_vm2, %v2106_v13, %v2107_v12 }
  0x7a   :  { %v2110_v15 = vpop.permute.xlu1 %2109  ;;  %v2100_v16 = vpop.permute.xlu0 %2099  ;;  %v1969_v17 = vpack.c.bf16 %v76_v14, %v85_v0 }
  0x7b   :  { %v2112_v18 = vunpack.i.h.bf16 %v2110_v15  ;;  %v2111_v19 = vunpack.i.l.bf16 %v2110_v15  ;;  %v2102_v20 = vunpack.i.h.bf16 %v2100_v16  ;;  %v2101_v21 = vunpack.i.l.bf16 %v2100_v16 }
  0x7c   :  { %1970 = vmatprep.subr.bf16.mxu0 %v1969_v17 }
  0x7d   :  { %v75_v22 = vsel %vm74_vm1, %v2101_v21, %v2096_v11  ;;  %v77_v23 = vsel %vm74_vm1, %v2097_v10, %v2102_v20  ;;  %v128_v25 = vsel %vm126_vm3, %v2111_v19, %v2112_v18 }
  0x7e   :  { %v2120_v26 = vpop.permute.xlu1 %2119  ;;  %v2115_v27 = vpop.permute.xlu0 %2114  ;;  %v1971_v28 = vpack.c.bf16 %v75_v22, %v2424_v2  ;;  %v1986_v29 = vpack.c.bf16 %v77_v23, %v2419_v1  ;;  %v1973_v30 = vpack.c.bf16 %v128_v25, %v102_v24 }
  0x7f   :  { %v2122_v31 = vunpack.i.h.bf16 %v2120_v26  ;;  %v2121_v32 = vunpack.i.l.bf16 %v2120_v26  ;;  %v2117_v33 = vunpack.i.h.bf16 %v2115_v27  ;;  %v2116_v34 = vunpack.i.l.bf16 %v2115_v27  ;;  %v2488_v26 = vld [vmem:[%s2896_s1] sm:$0xff] }
  0x80   :  { %1972 = vmatpush1.bf16.msra.mxu0 %v1971_v28  ;;  %1987 = vmatpush3.bf16.msra.mxu1 %v1986_v29  ;;  %v14_v29 = vlaneseq }
  0x81   :  { %1974 = vmatprep.subr.bf16.mxu0 %v1973_v30  ;;  %1988 = vmatprep.subr.bf16.mxu1 %v2381_v3  ;;  %v101_v35 = vsel %vm100_vm2, %v2116_v34, %v2106_v13  ;;  %v127_v36 = vsel %vm126_vm3, %v2121_v32, %v2111_v19  ;;  %v103_v37 = vsel %vm100_vm2, %v2107_v12, %v2117_v33 }
  0x82   :  { %v2130_v38 = vpop.permute.xlu1 %2129  ;;  %v2125_v39 = vpop.permute.xlu0 %2124  ;;  %v1975_v40 = vpack.c.bf16 %v127_v36, %v101_v35  ;;  %v129_v41 = vsel %vm126_vm3, %v2112_v18, %v2122_v31  ;;  %v15_v30 = vand.u32 127, %v14_v29 }
  0x83   :  { %v2132_v42 = vunpack.i.h.bf16 %v2130_v38  ;;  %v2131_v43 = vunpack.i.l.bf16 %v2130_v38  ;;  %v2127_v44 = vunpack.i.h.bf16 %v2125_v39  ;;  %v2126_v45 = vunpack.i.l.bf16 %v2125_v39 }
  0x84   :  { %1976 = vmatpush1.bf16.msra.mxu0 %v1975_v40  ;;  %v1989_v46 = vpack.c.bf16 %v129_v41, %v103_v37  ;;  %v17_v31 = vadd.s32 256, %v15_v30  ;;  %v16_v32 = vadd.s32 128, %v15_v30  ;;  %v18_v33 = vcvt.s32.f32 %v15_v30  ;;  %v2531_v30 = vld [vmem:[%s2895_s0 + $0x20] sm:$0xff] }
  0x85   :  { %v154_v47 = vsel %vm152_vm4, %v2126_v45, %v2127_v44  ;;  %v180_v48 = vsel %vm178_vm5, %v2131_v43, %v2132_v42 }
  0x86   :  { %1990 = vmatpush3.bf16.msra.mxu1 %v1989_v46  ;;  %v2140_v49 = vpop.permute.xlu1 %2139  ;;  %v2135_v50 = vpop.permute.xlu0 %2134  ;;  %v1977_v51 = vpack.c.bf16 %v180_v48, %v154_v47  ;;  %v20_v34 = vcvt.s32.f32 %v17_v31  ;;  %v19_v35 = vcvt.s32.f32 %v16_v32  ;;  %v21_v36 = vadd.f32 0.5, %v18_v33  ;;  %v1805_v31 = vld [vmem:[%s2895_s0 + $0x38] sm:$0xff] }
  0x87   :  { %v2142_v52 = vunpack.i.h.bf16 %v2140_v49  ;;  %v2141_v53 = vunpack.i.l.bf16 %v2140_v49  ;;  %v2137_v54 = vunpack.i.h.bf16 %v2135_v50  ;;  %v2136_v55 = vunpack.i.l.bf16 %v2135_v50  ;;  %1991 = vmatprep.subr.bf16.mxu1 %v2381_v3 }
  0x88   :  { %1978 = vmatprep.subr.bf16.mxu0 %v1977_v51  ;;  %v23_v37 = vadd.f32 0.5, %v20_v34  ;;  %v22_v38 = vadd.f32 0.5, %v19_v35  ;;  %v24_v39 = vmul.f32 0.055555556, %v21_v36 }
  0x89   :  { %v153_v56 = vsel %vm152_vm4, %v2136_v55, %v2126_v45  ;;  %v179_v57 = vsel %vm178_vm5, %v2141_v53, %v2131_v43  ;;  %v155_v58 = vsel %vm152_vm4, %v2127_v44, %v2137_v54  ;;  %v181_v59 = vsel %vm178_vm5, %v2132_v42, %v2142_v52 }
  0x8a   :  { %v2150_v60 = vpop.permute.xlu1 %2149  ;;  %v2145_v61 = vpop.permute.xlu0 %2144  ;;  %v1979_v62 = vpack.c.bf16 %v179_v57, %v153_v56  ;;  %v1992_v63 = vpack.c.bf16 %v181_v59, %v155_v58  ;;  %v26_v40 = vmul.f32 0.055555556, %v23_v37  ;;  %v25_v41 = vmul.f32 0.055555556, %v22_v38 }
  0x8b   :  { %v2152_v0 = vunpack.i.h.bf16 %v2150_v60  ;;  %v2151_v1 = vunpack.i.l.bf16 %v2150_v60  ;;  %v2147_v2 = vunpack.i.h.bf16 %v2145_v61  ;;  %v2146_v4 = vunpack.i.l.bf16 %v2145_v61 }
  0x8c   :  { %1980 = vmatpush1.bf16.msra.mxu0 %v1979_v62  ;;  %1993 = vmatpush3.bf16.msra.mxu1 %v1992_v63  ;;  %v27_v42 = vfloor.f32 %v24_v39  ;;  %v29_v43 = vfloor.f32 %v26_v40  ;;  %v28_v44 = vfloor.f32 %v25_v41 }
  0x8d   :  { %v206_v5 = vsel %vm204_vm6, %v2146_v4, %v2147_v2  ;;  %v232_v6 = vsel %vm230_vm7, %v2151_v1, %v2152_v0  ;;  %1994 = vmatprep.subr.bf16.mxu1 %v2381_v3 }
  0x8e   :  { %v2160_v8 = vpop.permute.xlu1 %2159  ;;  %v2155_v9 = vpop.permute.xlu0 %2154  ;;  %v1981_v10 = vpack.c.bf16 %v232_v6, %v206_v5  ;;  %v30_v45 = vmul.f32 18.0, %v27_v42  ;;  %v32_v46 = vmul.f32 18.0, %v29_v43  ;;  %v31_v47 = vmul.f32 18.0, %v28_v44 }
  0x8f   :  { %v2162_v11 = vunpack.i.h.bf16 %v2160_v8  ;;  %v2161_v12 = vunpack.i.l.bf16 %v2160_v8  ;;  %v2157_v13 = vunpack.i.h.bf16 %v2155_v9  ;;  %v2156_v14 = vunpack.i.l.bf16 %v2155_v9 }
  0x90   :  { %1982 = vmatprep.subr.bf16.mxu0 %v1981_v10  ;;  %v33_v48 = vsub.f32 %v18_v33, %v30_v45  ;;  %v35_v49 = vsub.f32 %v20_v34, %v32_v46  ;;  %v34_v50 = vsub.f32 %v19_v35, %v31_v47  ;;  %vm36_vm10 = vcmp.lt.f32.partialorder %v27_v42, 16.0 }
  0x91   :  { %v205_v15 = vsel %vm204_vm6, %v2156_v14, %v2146_v4  ;;  %v231_v16 = vsel %vm230_vm7, %v2161_v12, %v2151_v1  ;;  %v207_v17 = vsel %vm204_vm6, %v2147_v2, %v2157_v13  ;;  %v233_v18 = vsel %vm230_vm7, %v2152_v0, %v2162_v11 }
  0x92   :  { %v253_v19 = vpop.permute.xlu1 %252  ;;  %v251_v20 = vpop.permute.xlu0 %250  ;;  %v1983_v21 = vpack.c.bf16 %v231_v16, %v205_v15  ;;  %v1995_v22 = vpack.c.bf16 %v233_v18, %v207_v17  ;;  %vm39_vm11 = vcmp.lt.f32.partialorder %v33_v48, 16.0  ;;  %vm38_vm12 = vcmp.lt.f32.partialorder %v29_v43, 16.0 }
  0x93   :  { %v258_v23 = vsel %vm2902_vm8, %v251_v20, %v253_v19  ;;  %vm41_vm13 = vcmp.lt.f32.partialorder %v35_v49, 16.0  ;;  %vm37_vm14 = vcmp.lt.f32.partialorder %v28_v44, 16.0  ;;  %vm40_vm15 = vcmp.lt.f32.partialorder %v34_v50, 16.0 }
  0x94   :  { %1984 = vmatpush1.bf16.msra.mxu0 %v1983_v21  ;;  %1996 = vmatpush3.bf16.msra.mxu1 %v1995_v22  ;;  %v2168_v33 = vpack.i.bf16 %v1805_v31, %v2531_v30 }
  0x95   :  { %314 = vmatprep.subr.mxu0 %v258_v23  ;;  %1901 = vmatprep.subr.mxu1 %v2387_v7  ;;  %v2515_v23 = vld [vmem:[%s2895_s0 + $0x28] sm:$0xff] }
  0x96   :  { %v255_v24 = vpop.permute.xlu1 %254  ;;  %v249_v25 = vpop.permute.xlu0 %248 }
  0x97   :  { %v257_v27 = vsel %vm2902_vm8, %v249_v25, %v251_v20  ;;  %v259_v28 = vsel %vm2902_vm8, %v253_v19, %v255_v24  ;;  %vm43_vm8 = vmand %vm37_vm14, %vm40_vm15  ;;  %v2520_v24 = vld [vmem:[%s2895_s0 + $0x30] sm:$0xff] }
  0x98   :  { %315 = vmatpush1.msra.mxu0 %v257_v27  ;;  %1902 = vmatpush3.msra.mxu1 %v259_v28  ;;  %v2507_v53 = vsel %vm43_vm8, 1.0, %v2387_v7  ;;  %v2163_v29 = vpack.i.bf16 %v2520_v24, %v2515_v23  ;;  %vm481_vm8 = vcmask 154624  }
  0x99   :  { %1795 = vmatmul.mubr.msk.f32.vlgmr.msra.gmra.mrb[0].mxu0 %vm2901_vm9, %v2488_v26  ;;  %1904 = vmatmul.mubr.msk.f32.vlgmr.msra.gmra.mrb[0].mxu1 %vm2901_vm9, %v2488_v26  ;;  %vm44_vm9 = vmand %vm38_vm12, %vm41_vm13  ;;  %vm2907_vm13 = vmmov 0  }
  0x9a   :  { %2013 = vmatprep.subr.bf16.mxu1 %v2381_v3  ;;  %1924 = vmatprep.mubr.msk.f32.mxu1 %vm2899_vm0, %v2387_v7  ;;  %vm42_vm0 = vmand %vm36_vm10, %vm39_vm11  ;;  %v2504_v52 = vsel %vm44_vm9, 1.0, %v2387_v7  ;;  %vm2903_vm9 = vcmask 736256   ;;  %vm2905_vm11 = vcmask 588800  }
  0x9b   :  { %794 = vmatprep.mubr.f32.mxu0 %v2387_v7  ;;  %v2501_v51 = vsel %vm42_vm0, 1.0, %v2387_v7  ;;  %vm488_vm0 = vcmask 1047704   ;;  %vm2904_vm10 = vmmov %vm2903_vm9 }
  0x9c   :  { %vm2906_vm12 = vmmov %vm2903_vm9 }
  0x9d   :  { %vm2908_vm14 = vmmov %vm2905_vm11 }
  0x9e   :  { %vm2909_vm15 = vmmov %vm2903_vm9 }
 0x16c   :  { %v364_v54 = vpop.f32.mrb[0].mxu0  ;;  %v435_v55 = vpop.f32.mrb[0].mxu1 }
 0x16d   :  { %v439_v56 = vmul.f32 %v364_v54, %v2501_v51  ;;  %v366_v57 = vpop.f32.mrb[1].mxu0  ;;  %v441_v58 = vmul.f32 %v435_v55, %v2504_v52  ;;  %v1905_v59 = vpop.f32.mrb[1].mxu1 }
 0x16e   :  { %v440_v60 = vmul.f32 %v366_v57, %v2507_v53 }
 0x16f   :  { %v446_v61 = vmul.f32 %v439_v56, %v439_v56  ;;  %v448_v0 = vmul.f32 %v441_v58, %v441_v58 }
 0x170   :  { %v447_v62 = vmul.f32 %v440_v60, %v440_v60  ;;  %v442_v63 = vadd.f32 %v440_v60, %v439_v56 }
 0x172   :  { %v443_v1 = vadd.f32 %v442_v63, %v441_v58  ;;  %v449_v2 = vadd.f32 %v447_v62, %v446_v61 }
 0x174   :  { %444 = vadd.xlane.f32.xlu0 %v443_v1  ;;  %v450_v4 = vadd.f32 %v449_v2, %v448_v0 }
 0x176   :  { %451 = vadd.xlane.f32.xlu1 %v450_v4 }
 0x201   :  { %v445_v5 = vpop.xlane.xlu0 %444 }
 0x202   :  { %v453_v6 = vmul.f32 0.00390625, %v445_v5 }
 0x203   :  { %v452_v8 = vpop.xlane.xlu1 %451 }
 0x204   :  { %v454_v9 = vmul.f32 0.00390625, %v452_v8  ;;  %v455_v10 = vmul.f32 %v453_v6, %v453_v6  ;;  %v459_v14 = vsub.f32 %v366_v57, %v453_v6  ;;  %v458_v15 = vsub.f32 %v364_v54, %v453_v6 }
 0x205   :  { %v460_v16 = vsub.f32 %v435_v55, %v453_v6 }
 0x206   :  { %v456_v11 = vsub.f32 %v454_v9, %v455_v10 }
 0x208   :  { %v457_v12 = vmax.f32 %v456_v11, 0.0 }
 0x20a   :  { %v461_v13 = vadd.f32 1e-05, %v457_v12 }
 0x20c   :  { %2373 = vrsqrt.f32 %v461_v13 }
 0x216   :  { %v2374_v17 = vpop.eup %2373 }
 0x217   :  { %v464_v18 = vmul.f32 %v2374_v17, %v459_v14  ;;  %v463_v19 = vmul.f32 %v2374_v17, %v458_v15  ;;  %v465_v20 = vmul.f32 %v2374_v17, %v460_v16 }
 0x219   :  { %v467_v21 = vmax.f32 %v464_v18, 0.0  ;;  %v466_v22 = vmax.f32 %v463_v19, 0.0  ;;  %v468_v28 = vmax.f32 %v465_v20, 0.0 }
 0x21b   :  { %v470_v25 = vmul.f32 %v467_v21, %v2507_v53  ;;  %v469_v27 = vmul.f32 %v466_v22, %v2501_v51  ;;  %v471_v32 = vmul.f32 %v468_v28, %v2504_v52 }
 0x21d   :  { %477 = vrot.lane.b32.xlu1 %v470_v25, %s2392_s6  ;;  %475 = vrot.lane.b32.xlu0 %v469_v27, %s2392_s6 }
 0x221   :  { %479 = vrot.lane.b32.xlu0 %v471_v32, %s2392_s6  ;;  %2164 = vrot.lane.b32.xlu1 %v2163_v29, %s2383_s21 }
 0x225   :  { %2169 = vrot.lane.b32.xlu1 %v2168_v33, %s2383_s21  ;;  %2179 = vrot.lane.b32.xlu0 %v2163_v29, %s2384_s22 }
 0x229   :  { %2174 = vrot.lane.b32.xlu1 %v2163_v29, %s2382_s20  ;;  %2189 = vrot.lane.b32.xlu0 %v2168_v33, %s2384_s22 }
 0x22d   :  { %2184 = vrot.lane.b32.xlu1 %v2168_v33, %s2382_s20 }
 0x28f   :  { %v476_v34 = vpop.permute.xlu0 %475  ;;  %v478_v39 = vpop.permute.xlu1 %477 }
 0x290   :  { %489 = vst.msk [vmem:[#allocation2] sm:$0xff] %vm488_vm0, %v476_v34  ;;  %v482_v41 = vsel %vm481_vm8, %v476_v34, %v478_v39 }
 0x293   :  { %v480_v35 = vpop.permute.xlu0 %479  ;;  %v2586_v43 = vpop.permute.xlu1 %2164 }
 0x294   :  { %492 = vst.msk [vmem:[#allocation2 + $0x18] sm:$0xff] %vm481_vm8, %v480_v35  ;;  %v483_v40 = vsel %vm481_vm8, %v478_v39, %v480_v35  ;;  %v2167_v12 = vunpack.i.h.bf16 %v2586_v43  ;;  %v2166_v13 = vunpack.i.l.bf16 %v2586_v43 }
 0x295   :  { %v2228_v42 = vpack.i.bf16 %v483_v40, %v482_v41 }
 0x297   :  { %v2547_v36 = vld [vmem:[#allocation2] sm:$0xff]  ;;  %v2588_v44 = vpop.permute.xlu1 %2169  ;;  %v2592_v46 = vpop.permute.xlu0 %2179 }
 0x29b   :  { %v527_v37 = vld [vmem:[#allocation2 + $0x18] sm:$0xff]  ;;  %v2590_v45 = vpop.permute.xlu1 %2174  ;;  %v2596_v48 = vpop.permute.xlu0 %2189 }
 0x29c   :  { %v2198_v38 = vpack.i.bf16 %v527_v37, %v2547_v36 }
 0x29e   :  { %2199 = vrot.lane.b32.xlu1 %v2198_v38, %s2382_s20  ;;  %2194 = vrot.lane.b32.xlu0 %v2198_v38, %s2383_s21 }
 0x29f   :  { %v2594_v47 = vpop.permute.xlu1 %2184 }
 0x2a2   :  { %2209 = vrot.lane.b32.xlu1 %v2198_v38, %s2386_s24  ;;  %2204 = vrot.lane.b32.xlu0 %v2198_v38, %s2384_s22 }
 0x2a6   :  { %2219 = vrot.lane.b32.xlu1 %v2198_v38, %s2389_s26  ;;  %2214 = vrot.lane.b32.xlu0 %v2198_v38, %s2385_s23 }
 0x2aa   :  { %2224 = vrot.lane.b32.xlu0 %v2198_v38, %s2388_s25  ;;  %2229 = vrot.lane.b32.xlu1 %v2228_v42, %s2383_s21 }
 0x2ae   :  { %682 = vrot.lane.b32.xlu0 %v2547_v36, %s2391_s27  ;;  %2234 = vrot.lane.b32.xlu1 %v2228_v42, %s2382_s20 }
 0x2b2   :  { %688 = vrot.lane.b32.xlu0 %v527_v37, %s2391_s27  ;;  %2244 = vrot.lane.b32.xlu1 %v2228_v42, %s2386_s24 }
 0x2b6   :  { %2239 = vrot.lane.b32.xlu0 %v2228_v42, %s2384_s22  ;;  %2254 = vrot.lane.b32.xlu1 %v2228_v42, %s2389_s26 }
 0x2ba   :  { %2249 = vrot.lane.b32.xlu0 %v2228_v42, %s2385_s23  ;;  %2259 = vrot.lane.b32.xlu1 %v2163_v29, %s2386_s24 }
 0x2be   :  { %2264 = vrot.lane.b32.xlu0 %v2228_v42, %s2388_s25  ;;  %684 = vrot.lane.b32.xlu1 %v482_v41, %s2391_s27 }
 0x2c2   :  { %686 = vrot.lane.b32.xlu0 %v483_v40, %s2391_s27  ;;  %2274 = vrot.lane.b32.xlu1 %v2168_v33, %s2386_s24 }
 0x2c6   :  { %2269 = vrot.lane.b32.xlu0 %v2163_v29, %s2385_s23  ;;  %2284 = vrot.lane.b32.xlu1 %v2163_v29, %s2389_s26 }
 0x2ca   :  { %2279 = vrot.lane.b32.xlu0 %v2168_v33, %s2385_s23  ;;  %2294 = vrot.lane.b32.xlu1 %v2168_v33, %s2389_s26 }
 0x2ce   :  { %2289 = vrot.lane.b32.xlu0 %v2163_v29, %s2388_s25  ;;  %1118 = vrot.lane.b32.xlu1 %v2515_v23, %s2391_s27 }
 0x2d2   :  { %2299 = vrot.lane.b32.xlu0 %v2168_v33, %s2388_s25  ;;  %1116 = vrot.lane.b32.xlu1 %v2531_v30, %s2391_s27 }
 0x2d6   :  { %1120 = vrot.lane.b32.xlu0 %v2520_v24, %s2391_s27 }
 0x2da   :  { %1122 = vrot.lane.b32.xlu0 %v1805_v31, %s2391_s27 }
 0x310   :  { %v2200_v49 = vpop.permute.xlu1 %2199  ;;  %v2195_v50 = vpop.permute.xlu0 %2194 }
 0x311   :  { %v2197_v60 = vunpack.i.h.bf16 %v2195_v50  ;;  %v2196_v61 = vunpack.i.l.bf16 %v2195_v50  ;;  %v2202_v15 = vunpack.i.h.bf16 %v2200_v49  ;;  %v2201_v16 = vunpack.i.l.bf16 %v2200_v49 }
 0x314   :  { %v2598_v54 = vpop.permute.xlu1 %2209  ;;  %v2205_v55 = vpop.permute.xlu0 %2204 }
 0x315   :  { %v2212_v17 = vunpack.i.h.bf16 %v2598_v54  ;;  %v2207_v21 = vunpack.i.h.bf16 %v2205_v55  ;;  %v2206_v22 = vunpack.i.l.bf16 %v2205_v55  ;;  %v2211_v28 = vunpack.i.l.bf16 %v2598_v54 }
 0x318   :  { %v2600_v56 = vpop.permute.xlu1 %2219  ;;  %v2215_v57 = vpop.permute.xlu0 %2214 }
 0x319   :  { %v2222_v29 = vunpack.i.h.bf16 %v2600_v56  ;;  %v2217_v33 = vunpack.i.h.bf16 %v2215_v57  ;;  %v2216_v37 = vunpack.i.l.bf16 %v2215_v57 }
 0x31c   :  { %v2230_v58 = vpop.permute.xlu1 %2229  ;;  %v2602_v59 = vpop.permute.xlu0 %2224 }
 0x31d   :  { %v2232_v62 = vunpack.i.h.bf16 %v2230_v58  ;;  %v2231_v63 = vunpack.i.l.bf16 %v2230_v58 }
 0x31f   :  { %v515_v0 = vsel %vm74_vm1, %v2196_v61, %v2231_v63  ;;  %v517_v1 = vsel %vm74_vm1, %v2232_v62, %v2197_v60  ;;  %v516_v2 = vsel %vm74_vm1, %v2231_v63, %v2232_v62 }
 0x320   :  { %v1999_v4 = vpack.c.bf16 %v515_v0, %v2547_v36  ;;  %v2014_v5 = vpack.c.bf16 %v517_v1, %v483_v40  ;;  %v2235_v6 = vpop.permute.xlu1 %2234  ;;  %v2608_v8 = vpop.permute.xlu0 %682  ;;  %v1997_v9 = vpack.c.bf16 %v516_v2, %v482_v41  ;;  %v2227_v2 = vunpack.i.h.bf16 %v2602_v59 }
 0x321   :  { %v2237_v14 = vunpack.i.h.bf16 %v2235_v6  ;;  %v2236_v18 = vunpack.i.l.bf16 %v2235_v6 }
 0x322   :  { %1998 = vmatprep.subr.bf16.mxu0 %v1997_v9  ;;  %2015 = vmatpush3.bf16.msra.mxu1 %v2014_v5 }
 0x323   :  { %2000 = vmatpush1.bf16.msra.mxu0 %v1999_v4  ;;  %2016 = vmatprep.subr.bf16.mxu1 %v2381_v3  ;;  %v542_v34 = vsel %vm100_vm2, %v2237_v14, %v2202_v15  ;;  %v540_v38 = vsel %vm100_vm2, %v2201_v16, %v2236_v18  ;;  %v541_v55 = vsel %vm100_vm2, %v2236_v18, %v2237_v14  ;;  %v2226_v14 = vunpack.i.l.bf16 %v2602_v59 }
 0x324   :  { %v2245_v10 = vpop.permute.xlu1 %2244  ;;  %v2611_v11 = vpop.permute.xlu0 %688  ;;  %v2172_v18 = vunpack.i.h.bf16 %v2588_v44 }
 0x325   :  { %v2247_v31 = vunpack.i.h.bf16 %v2245_v10  ;;  %v2246_v32 = vunpack.i.l.bf16 %v2245_v10 }
 0x327   :  { %v592_v58 = vsel %vm152_vm4, %v2247_v31, %v2212_v17  ;;  %v591_v57 = vsel %vm152_vm4, %v2246_v32, %v2247_v31  ;;  %v590_v4 = vsel %vm152_vm4, %v2211_v28, %v2246_v32 }
 0x328   :  { %v2255_v19 = vpop.permute.xlu1 %2254  ;;  %v2240_v20 = vpop.permute.xlu0 %2239 }
 0x329   :  { %v2242_v25 = vunpack.i.h.bf16 %v2240_v20  ;;  %v2241_v27 = vunpack.i.l.bf16 %v2240_v20  ;;  %v2257_v60 = vunpack.i.h.bf16 %v2255_v19  ;;  %v2256_v62 = vunpack.i.l.bf16 %v2255_v19 }
 0x32a   :  { %v2171_v19 = vunpack.i.l.bf16 %v2588_v44  ;;  %v2221_v20 = vunpack.i.l.bf16 %v2600_v56  ;;  %v2182_v56 = vunpack.i.h.bf16 %v2592_v46 }
 0x32b   :  { %v565_v35 = vsel %vm126_vm3, %v2206_v22, %v2241_v27  ;;  %v567_v36 = vsel %vm126_vm3, %v2242_v25, %v2207_v21  ;;  %v566_v42 = vsel %vm126_vm3, %v2241_v27, %v2242_v25  ;;  %v642_v21 = vsel %vm204_vm6, %v2257_v60, %v2222_v29 }
 0x32c   :  { %v2017_v39 = vpack.c.bf16 %v567_v36, %v542_v34  ;;  %v2622_v40 = vpop.permute.xlu1 %2259  ;;  %v2250_v41 = vpop.permute.xlu0 %2249  ;;  %v2003_v49 = vpack.c.bf16 %v565_v35, %v540_v38  ;;  %v2001_v61 = vpack.c.bf16 %v566_v42, %v541_v55  ;;  %v641_v59 = vsel %vm204_vm6, %v2256_v62, %v2257_v60 }
 0x32d   :  { %v2252_v50 = vunpack.i.h.bf16 %v2250_v41  ;;  %v2251_v54 = vunpack.i.l.bf16 %v2250_v41  ;;  %v640_v28 = vsel %vm204_vm6, %v2221_v20, %v2256_v62  ;;  %v2181_v29 = vunpack.i.l.bf16 %v2592_v46 }
 0x32e   :  { %2018 = vmatpush3.bf16.msra.mxu1 %v2017_v39  ;;  %2002 = vmatprep.subr.bf16.mxu0 %v2001_v61  ;;  %v950_v35 = vsel %vm74_vm1, %v2166_v13, %v2167_v12  ;;  %v949_v36 = vsel %vm74_vm1, %v2171_v19, %v2166_v13  ;;  %v2176_v38 = vunpack.i.l.bf16 %v2590_v45  ;;  %v2192_v46 = vunpack.i.h.bf16 %v2596_v48 }
 0x32f   :  { %v615_v63 = vsel %vm178_vm5, %v2216_v37, %v2251_v54  ;;  %v617_v0 = vsel %vm178_vm5, %v2252_v50, %v2217_v33  ;;  %2019 = vmatprep.subr.bf16.mxu1 %v2381_v3  ;;  %v616_v1 = vsel %vm178_vm5, %v2251_v54, %v2252_v50  ;;  %2004 = vmatpush1.bf16.msra.mxu0 %v2003_v49  ;;  %v2177_v37 = vunpack.i.h.bf16 %v2590_v45  ;;  %v2672_v45 = vld [vmem:[%s2897_s2] sm:$0xff] }
 0x330   :  { %v2020_v5 = vpack.c.bf16 %v617_v0, %v592_v58  ;;  %v2634_v6 = vpop.permute.xlu1 %684  ;;  %v2265_v9 = vpop.permute.xlu0 %2264  ;;  %v2005_v10 = vpack.c.bf16 %v616_v1, %v591_v57  ;;  %v2007_v15 = vpack.c.bf16 %v615_v63, %v590_v4  ;;  %v951_v39 = vsel %vm74_vm1, %v2167_v12, %v2172_v18 }
 0x331   :  { %v2267_v16 = vunpack.i.h.bf16 %v2265_v9  ;;  %v2266_v17 = vunpack.i.l.bf16 %v2265_v9  ;;  %v2187_v41 = vunpack.i.h.bf16 %v2594_v47  ;;  %v2191_v42 = vunpack.i.l.bf16 %v2596_v48 }
 0x332   :  { %2006 = vmatprep.subr.bf16.mxu0 %v2005_v10  ;;  %2021 = vmatpush3.bf16.msra.mxu1 %v2020_v5  ;;  %v2186_v13 = vunpack.i.l.bf16 %v2594_v47  ;;  %v2025_v50 = vpack.c.bf16 %v950_v35, %v2515_v23  ;;  %v2027_v43 = vpack.c.bf16 %v949_v36, %v2531_v30  ;;  %v1000_v47 = vsel %vm126_vm3, %v2181_v29, %v2182_v56 }
 0x333   :  { %v665_v22 = vsel %vm230_vm7, %v2226_v14, %v2266_v17  ;;  %v667_v25 = vsel %vm230_vm7, %v2267_v16, %v2227_v2  ;;  %2022 = vmatprep.subr.bf16.mxu1 %v2381_v3  ;;  %v666_v27 = vsel %vm230_vm7, %v2266_v17, %v2267_v16  ;;  %2008 = vmatpush1.bf16.msra.mxu0 %v2007_v15  ;;  %v2261_v62 = vunpack.i.l.bf16 %v2622_v40 }
 0x334   :  { %v2023_v31 = vpack.c.bf16 %v667_v25, %v642_v21  ;;  %v687_v44 = vpop.permute.xlu0 %686  ;;  %v2009_v32 = vpack.c.bf16 %v666_v27, %v641_v59  ;;  %v2011_v33 = vpack.c.bf16 %v665_v22, %v640_v28  ;;  %v2649_v34 = vpop.permute.xlu1 %2274  ;;  %v2042_v55 = vpack.c.bf16 %v951_v39, %v2520_v24 }
 0x335   :  { %v692_v12 = vsel %vm2903_vm9, %v687_v44, %v2611_v11  ;;  %v691_v48 = vsel %vm2904_vm10, %v2634_v6, %v687_v44  ;;  %v1001_v58 = vsel %vm126_vm3, %v2182_v56, %v2192_v46  ;;  %v975_v23 = vsel %vm100_vm2, %v2176_v38, %v2177_v37  ;;  %vm2910_vm10 = vmmov %vm2903_vm9 }
 0x336   :  { %2010 = vmatprep.subr.bf16.mxu0 %v2009_v32  ;;  %2024 = vmatpush3.bf16.msra.mxu1 %v2023_v31  ;;  %v976_v30 = vsel %vm100_vm2, %v2177_v37, %v2187_v41  ;;  %v999_v11 = vsel %vm126_vm3, %v2191_v42, %v2181_v29  ;;  %v974_v57 = vsel %vm100_vm2, %v2186_v13, %v2176_v38  ;;  %v2262_v24 = vunpack.i.h.bf16 %v2622_v40 }
 0x337   :  { %1922 = vmatprep.subr.mxu1 %v2387_v7  ;;  %2012 = vmatpush1.bf16.msra.mxu0 %v2011_v33  ;;  %v690_v63 = vsel %vm2906_vm12, %v2608_v8, %v2634_v6  ;;  %v2277_v1 = vunpack.i.h.bf16 %v2649_v34  ;;  %v2045_v40 = vpack.c.bf16 %v1001_v58, %v976_v30  ;;  %v2029_v8 = vpack.c.bf16 %v1000_v47, %v975_v23  ;;  %vm2911_vm12 = vmmov %vm2905_vm11 }
 0x338   :  { %v2270_v49 = vpop.permute.xlu0 %2269  ;;  %v2680_v54 = vpop.permute.xlu1 %2284  ;;  %746 = vmatprep.subr.mxu0 %v691_v48  ;;  %v2031_v15 = vpack.c.bf16 %v999_v11, %v974_v57  ;;  %v2276_v16 = vunpack.i.l.bf16 %v2649_v34  ;;  %v1025_v18 = vsel %vm152_vm4, %v2261_v62, %v2262_v24 }
 0x339   :  { %v2272_v60 = vunpack.i.h.bf16 %v2270_v49  ;;  %v2271_v61 = vunpack.i.l.bf16 %v2270_v49  ;;  %v2287_v2 = vunpack.i.h.bf16 %v2680_v54  ;;  %v2286_v4 = vunpack.i.l.bf16 %v2680_v54 }
 0x33a   :  { %1923 = vmatpush3.msra.mxu1 %v692_v12  ;;  %v1026_v19 = vsel %vm152_vm4, %v2262_v24, %v2277_v1  ;;  %v1024_v32 = vsel %vm152_vm4, %v2276_v16, %v2261_v62 }
 0x33b   :  { %2041 = vmatprep.subr.bf16.mxu1 %v2381_v3  ;;  %1925 = vmatmul.mubr.msk.f32.vlgmr.msra.gmra.mrb[2].mxu1 %vm2905_vm11, %v2672_v45  ;;  %v1050_v14 = vsel %vm178_vm5, %v2271_v61, %v2272_v60  ;;  %v1075_v22 = vsel %vm204_vm6, %v2286_v4, %v2287_v2 }
 0x33c   :  { %v2280_v0 = vpop.permute.xlu0 %2279  ;;  %2043 = vmatpush3.bf16.msra.mxu1 %v2042_v55  ;;  %1945 = vmatprep.mubr.msk.f32.mxu1 %vm2907_vm13, %v2387_v7  ;;  %v2295_v10 = vpop.permute.xlu1 %2294  ;;  %v2033_v27 = vpack.c.bf16 %v1050_v14, %v1025_v18 }
 0x33d   :  { %747 = vmatpush1.msra.mxu0 %v690_v63  ;;  %v2282_v5 = vunpack.i.h.bf16 %v2280_v0  ;;  %2044 = vmatprep.subr.bf16.mxu1 %v2381_v3  ;;  %v2281_v9 = vunpack.i.l.bf16 %v2280_v0  ;;  %v2297_v28 = vunpack.i.h.bf16 %v2295_v10  ;;  %v2296_v31 = vunpack.i.l.bf16 %v2295_v10 }
 0x33e   :  { %2026 = vmatprep.subr.bf16.mxu0 %v2025_v50  ;;  %1797 = vmatmul.mubr.msk.f32.vlgmr.msra.gmra.mrb[2].mxu0 %vm2908_vm14, %v2672_v45 }
 0x33f   :  { %v1051_v6 = vsel %vm178_vm5, %v2272_v60, %v2282_v5  ;;  %2028 = vmatpush1.bf16.msra.mxu0 %v2027_v43  ;;  %1228 = vmatprep.mubr.f32.mxu0 %v2387_v7  ;;  %v1049_v25 = vsel %vm178_vm5, %v2281_v9, %v2271_v61  ;;  %v1074_v37 = vsel %vm204_vm6, %v2296_v31, %v2286_v4 }
 0x340   :  { %2030 = vmatprep.subr.bf16.mxu0 %v2029_v8  ;;  %v2290_v17 = vpop.permute.xlu0 %2289  ;;  %2046 = vmatpush3.bf16.msra.mxu1 %v2045_v40  ;;  %v2048_v59 = vpack.c.bf16 %v1051_v6, %v1026_v19  ;;  %v2035_v33 = vpack.c.bf16 %v1049_v25, %v1024_v32  ;;  %v1119_v34 = vpop.permute.xlu1 %1118  ;;  %v1076_v38 = vsel %vm204_vm6, %v2287_v2, %v2297_v28 }
 0x341   :  { %v2292_v20 = vunpack.i.h.bf16 %v2290_v17  ;;  %v2291_v21 = vunpack.i.l.bf16 %v2290_v17  ;;  %2047 = vmatprep.subr.bf16.mxu1 %v2381_v3 }
 0x343   :  { %2032 = vmatpush1.bf16.msra.mxu0 %v2031_v15  ;;  %v1100_v44 = vsel %vm230_vm7, %v2291_v21, %v2292_v20 }
 0x344   :  { %2034 = vmatprep.subr.bf16.mxu0 %v2033_v27  ;;  %v2300_v56 = vpop.permute.xlu0 %2299  ;;  %2049 = vmatpush3.bf16.msra.mxu1 %v2048_v59  ;;  %v2037_v29 = vpack.c.bf16 %v1100_v44, %v1075_v22  ;;  %v1117_v50 = vpop.permute.xlu1 %1116 }
 0x345   :  { %v2302_v35 = vunpack.i.h.bf16 %v2300_v56  ;;  %v2301_v36 = vunpack.i.l.bf16 %v2300_v56  ;;  %2050 = vmatprep.subr.bf16.mxu1 %v2381_v3  ;;  %v1124_v48 = vsel %vm2910_vm10, %v1117_v50, %v1119_v34 }
 0x347   :  { %v1099_v46 = vsel %vm230_vm7, %v2301_v36, %v2291_v21  ;;  %v1101_v39 = vsel %vm230_vm7, %v2292_v20, %v2302_v35  ;;  %2036 = vmatpush1.bf16.msra.mxu0 %v2035_v33 }
 0x348   :  { %v2039_v41 = vpack.c.bf16 %v1099_v46, %v1074_v37  ;;  %v2051_v42 = vpack.c.bf16 %v1101_v39, %v1076_v38  ;;  %2038 = vmatprep.subr.bf16.mxu0 %v2037_v29  ;;  %v1121_v13 = vpop.permute.xlu0 %1120 }
 0x349   :  { %v1125_v49 = vsel %vm2909_vm15, %v1119_v34, %v1121_v13 }
 0x34a   :  { %2052 = vmatpush3.bf16.msra.mxu1 %v2051_v42 }
 0x34b   :  { %2040 = vmatpush1.bf16.msra.mxu0 %v2039_v41  ;;  %1943 = vmatprep.subr.mxu1 %v2387_v7 }
 0x34c   :  { %1180 = vmatprep.subr.mxu0 %v1125_v49  ;;  %v1123_v43 = vpop.permute.xlu0 %1122 }
 0x34d   :  { %v1126_v12 = vsel %vm2903_vm9, %v1121_v13, %v1123_v43 }
 0x34e   :  { %1944 = vmatpush3.msra.mxu1 %v1126_v12 }
 0x34f   :  { %1181 = vmatpush1.msra.mxu0 %v1124_v48  ;;  %1946 = vmatmul.mubr.msk.f32.vlgmr.msra.gmra.mrb[4].mxu1 %vm2905_vm11, %v2488_v26 }
 0x350   :  { %1834 = vmatmul.mubr.msk.f32.vlgmr.msra.gmra.mrb[4].mxu0 %vm2911_vm12, %v2488_v26  ;;  %2069 = vmatprep.subr.bf16.mxu1 %v2381_v3 }
 0x351   :  { %1658 = vmatprep.mubr.f32.mxu0 %v2387_v7  ;;  %1966 = vmatprep.mubr.msk.f32.mxu1 %vm2907_vm13, %v2387_v7 }
 0x40e   :  { %v2733_v54 = vpop.f32.mrb[2].mxu1 }
 0x40f   :  { %v1926_v47 = vpop.f32.mrb[3].mxu1  ;;  %v873_v58 = vmul.f32 %v2733_v54, %v2504_v52 }
 0x410   :  { %v898_v47 = vld [vmem:[%s2895_s0] sm:$0xff] }
 0x411   :  { %v2735_v55 = vpop.f32.mrb[2].mxu0  ;;  %v880_v57 = vmul.f32 %v873_v58, %v873_v58 }
 0x412   :  { %v871_v23 = vmul.f32 %v2735_v55, %v2501_v51  ;;  %v2741_v30 = vpop.f32.mrb[3].mxu0 }
 0x413   :  { %v872_v26 = vmul.f32 %v2741_v30, %v2507_v53 }
 0x414   :  { %v878_v11 = vmul.f32 %v871_v23, %v871_v23 }
 0x415   :  { %v879_v60 = vmul.f32 %v872_v26, %v872_v26  ;;  %v874_v61 = vadd.f32 %v872_v26, %v871_v23  ;;  %v901_v23 = vld [vmem:[%s2895_s0 + $0x18] sm:$0xff]  ;;  %v899_v26 = vld [vmem:[%s2895_s0 + $0x8] sm:$0xff] }
 0x417   :  { %v2745_v24 = vadd.f32 %v874_v61, %v873_v58  ;;  %v881_v62 = vadd.f32 %v879_v60, %v878_v11  ;;  %v900_v58 = vld [vmem:[%s2895_s0 + $0x10] sm:$0xff] }
 0x419   :  { %v2747_v63 = vadd.f32 %v881_v62, %v880_v57 }
 0x422   :  { %v1301_v0 = vpop.f32.mrb[4].mxu1 }
 0x423   :  { %v1230_v1 = vpop.f32.mrb[4].mxu0  ;;  %v1307_v2 = vmul.f32 %v1301_v0, %v2504_v52  ;;  %v1947_v4 = vpop.f32.mrb[5].mxu1 }
 0x424   :  { %v1305_v5 = vmul.f32 %v1230_v1, %v2501_v51  ;;  %v1232_v40 = vpop.f32.mrb[5].mxu0 }
 0x425   :  { %v1306_v9 = vmul.f32 %v1232_v40, %v2507_v53  ;;  %v1314_v14 = vmul.f32 %v1307_v2, %v1307_v2 }
 0x426   :  { %v1312_v8 = vmul.f32 %v1305_v5, %v1305_v5 }
 0x427   :  { %v1313_v6 = vmul.f32 %v1306_v9, %v1306_v9  ;;  %v1308_v10 = vadd.f32 %v1306_v9, %v1305_v5 }
 0x429   :  { %v1309_v15 = vadd.f32 %v1308_v10, %v1307_v2  ;;  %v1315_v16 = vadd.f32 %v1313_v6, %v1312_v8 }
 0x42b   :  { %1310 = vadd.xlane.f32.xlu1 %v1309_v15  ;;  %v1316_v17 = vadd.f32 %v1315_v16, %v1314_v14 }
 0x42d   :  { %1317 = vadd.xlane.f32.xlu0 %v1316_v17 }
 0x4b8   :  { %v1311_v18 = vpop.xlane.xlu1 %1310 }
 0x4b9   :  { %v1319_v19 = vmul.f32 0.00390625, %v1311_v18 }
 0x4ba   :  { %v1318_v20 = vpop.xlane.xlu0 %1317 }
 0x4bb   :  { %v1320_v21 = vmul.f32 0.00390625, %v1318_v20  ;;  %v1321_v22 = vmul.f32 %v1319_v19, %v1319_v19  ;;  %v1325_v28 = vsub.f32 %v1232_v40, %v1319_v19  ;;  %v1324_v31 = vsub.f32 %v1230_v1, %v1319_v19 }
 0x4bc   :  { %v1326_v44 = vsub.f32 %v1301_v0, %v1319_v19 }
 0x4bd   :  { %v1322_v25 = vsub.f32 %v1320_v21, %v1321_v22 }
 0x4bf   :  { %v1323_v59 = vmax.f32 %v1322_v25, 0.0 }
 0x4c1   :  { %v1327_v27 = vadd.f32 1e-05, %v1323_v59 }
 0x4c3   :  { %2375 = vrsqrt.f32 %v1327_v27 }
 0x4cd   :  { %v2376_v32 = vpop.eup %2375 }
 0x4ce   :  { %v1330_v56 = vmul.f32 %v2376_v32, %v1325_v28  ;;  %v1329_v29 = vmul.f32 %v2376_v32, %v1324_v31  ;;  %v1331_v33 = vmul.f32 %v2376_v32, %v1326_v44 }
 0x4d0   :  { %v1333_v34 = vmax.f32 %v1330_v56, 0.0  ;;  %v1332_v35 = vmax.f32 %v1329_v29, 0.0  ;;  %v1334_v38 = vmax.f32 %v1331_v33, 0.0 }
 0x4d2   :  { %v1336_v36 = vmul.f32 %v1333_v34, %v2507_v53  ;;  %v1335_v37 = vmul.f32 %v1332_v35, %v2501_v51  ;;  %v1337_v46 = vmul.f32 %v1334_v38, %v2504_v52 }
 0x4d4   :  { %1343 = vrot.lane.b32.xlu1 %v1336_v36, %s2392_s6  ;;  %1341 = vrot.lane.b32.xlu0 %v1335_v37, %s2392_s6 }
 0x4d8   :  { %1345 = vrot.lane.b32.xlu1 %v1337_v46, %s2392_s6 }
 0x546   :  { %v1344_v39 = vpop.permute.xlu1 %1343  ;;  %v1342_v41 = vpop.permute.xlu0 %1341 }
 0x547   :  { %v2759_v42 = vsel %vm481_vm8, %v1342_v41, %v1344_v39  ;;  %1353 = vst.msk [vmem:[#allocation2] sm:$0xff] %vm488_vm0, %v1342_v41 }
 0x54a   :  { %v1346_v13 = vpop.permute.xlu1 %1345 }
 0x54b   :  { %v2763_v49 = vsel %vm481_vm8, %v1344_v39, %v1346_v13  ;;  %1356 = vst.msk [vmem:[#allocation2 + $0x18] sm:$0xff] %vm481_vm8, %v1346_v13 }
 0x54c   :  { %v2343_v48 = vpack.i.bf16 %v2763_v49, %v2759_v42 }
 0x54e   :  { %v2766_v50 = vld [vmem:[#allocation2] sm:$0xff] }
 0x552   :  { %v1391_v43 = vld [vmem:[#allocation2 + $0x18] sm:$0xff] }
 0x553   :  { %v2308_v12 = vpack.i.bf16 %v1391_v43, %v2766_v50 }
 0x555   :  { %2309 = vrot.lane.b32.xlu0 %v2308_v12, %s2382_s20  ;;  %2304 = vrot.lane.b32.xlu1 %v2308_v12, %s2383_s21 }
 0x559   :  { %2319 = vrot.lane.b32.xlu0 %v2308_v12, %s2386_s24  ;;  %2314 = vrot.lane.b32.xlu1 %v2308_v12, %s2384_s22 }
 0x55d   :  { %2329 = vrot.lane.b32.xlu0 %v2308_v12, %s2389_s26  ;;  %2324 = vrot.lane.b32.xlu1 %v2308_v12, %s2385_s23 }
 0x561   :  { %2344 = vrot.lane.b32.xlu1 %v2343_v48, %s2384_s22  ;;  %2334 = vrot.lane.b32.xlu0 %v2343_v48, %s2383_s21 }
 0x565   :  { %2354 = vrot.lane.b32.xlu1 %v2343_v48, %s2385_s23  ;;  %2339 = vrot.lane.b32.xlu0 %v2343_v48, %s2382_s20 }
 0x569   :  { %2364 = vrot.lane.b32.xlu1 %v2343_v48, %s2388_s25  ;;  %2349 = vrot.lane.b32.xlu0 %v2343_v48, %s2386_s24 }
 0x56d   :  { %2369 = vrot.lane.b32.xlu1 %v2308_v12, %s2388_s25  ;;  %2359 = vrot.lane.b32.xlu0 %v2343_v48, %s2389_s26 }
 0x571   :  { %1550 = vrot.lane.b32.xlu1 %v2763_v49, %s2391_s27  ;;  %1548 = vrot.lane.b32.xlu0 %v2759_v42, %s2391_s27 }
 0x575   :  { %1552 = vrot.lane.b32.xlu1 %v1391_v43, %s2391_s27  ;;  %1546 = vrot.lane.b32.xlu0 %v2766_v50, %s2391_s27 }
 0x579   :  { %906 = vrot.lane.b32.xlu1 %v898_v47, %s2386_s24 }
 0x57d   :  { %910 = vrot.lane.b32.xlu1 %v900_v58, %s2386_s24 }
 0x581   :  { %912 = vrot.lane.b32.xlu1 %v901_v23, %s2386_s24 }
 0x594   :  { %876 = vadd.xlane.f32.xlu0 %v2745_v24 }
 0x598   :  { %883 = vadd.xlane.f32.xlu0 %v2747_v63 }
 0x5ae   :  { %908 = vrot.lane.b32.xlu0 %v899_v26, %s2386_s24 }
 0x5c7   :  { %v2310_v11 = vpop.permute.xlu0 %2309  ;;  %v2305_v60 = vpop.permute.xlu1 %2304 }
 0x5c8   :  { %v2307_v4 = vunpack.i.h.bf16 %v2305_v60  ;;  %v2306_v5 = vunpack.i.l.bf16 %v2305_v60  ;;  %v2312_v63 = vunpack.i.h.bf16 %v2310_v11  ;;  %v2311_v9 = vunpack.i.l.bf16 %v2310_v11 }
 0x5cb   :  { %v2320_v61 = vpop.permute.xlu0 %2319  ;;  %v2315_v57 = vpop.permute.xlu1 %2314 }
 0x5cc   :  { %v2322_v8 = vunpack.i.h.bf16 %v2320_v61  ;;  %v2321_v6 = vunpack.i.l.bf16 %v2320_v61  ;;  %v2317_v10 = vunpack.i.h.bf16 %v2315_v57  ;;  %v2316_v17 = vunpack.i.l.bf16 %v2315_v57 }
 0x5cf   :  { %v2810_v62 = vpop.permute.xlu0 %2329  ;;  %v2325_v0 = vpop.permute.xlu1 %2324 }
 0x5d0   :  { %v2332_v25 = vunpack.i.h.bf16 %v2810_v62  ;;  %v2331_v31 = vunpack.i.l.bf16 %v2810_v62  ;;  %v2327_v29 = vunpack.i.h.bf16 %v2325_v0  ;;  %v2326_v36 = vunpack.i.l.bf16 %v2325_v0 }
 0x5d3   :  { %v2345_v1 = vpop.permute.xlu1 %2344  ;;  %v2335_v2 = vpop.permute.xlu0 %2334 }
 0x5d4   :  { %v2337_v24 = vunpack.i.h.bf16 %v2335_v2  ;;  %v2336_v40 = vunpack.i.l.bf16 %v2335_v2  ;;  %v2347_v14 = vunpack.i.h.bf16 %v2345_v1  ;;  %v2346_v18 = vunpack.i.l.bf16 %v2345_v1 }
 0x5d6   :  { %v1381_v15 = vsel %vm74_vm1, %v2337_v24, %v2307_v4  ;;  %v1379_v16 = vsel %vm74_vm1, %v2306_v5, %v2336_v40  ;;  %v1380_v22 = vsel %vm74_vm1, %v2336_v40, %v2337_v24  ;;  %v1431_v33 = vsel %vm126_vm3, %v2347_v14, %v2317_v10  ;;  %vm2912_vm1 = vmmov %vm2903_vm9 }
 0x5d7   :  { %v2070_v19 = vpack.c.bf16 %v1381_v15, %v2763_v49  ;;  %v2355_v20 = vpop.permute.xlu1 %2354  ;;  %v2340_v21 = vpop.permute.xlu0 %2339  ;;  %v2055_v59 = vpack.c.bf16 %v1379_v16, %v2766_v50  ;;  %v2053_v56 = vpack.c.bf16 %v1380_v22, %v2759_v42  ;;  %v1429_v37 = vsel %vm126_vm3, %v2316_v17, %v2346_v18 }
 0x5d8   :  { %v2342_v27 = vunpack.i.h.bf16 %v2340_v21  ;;  %v2341_v28 = vunpack.i.l.bf16 %v2340_v21  ;;  %v2357_v44 = vunpack.i.h.bf16 %v2355_v20  ;;  %v2356_v32 = vunpack.i.l.bf16 %v2355_v20 }
 0x5d9   :  { %2071 = vmatpush3.bf16.msra.mxu1 %v2070_v19  ;;  %2054 = vmatprep.subr.bf16.mxu0 %v2053_v56  ;;  %v1430_v50 = vsel %vm126_vm3, %v2346_v18, %v2347_v14  ;;  %vm2914_vm3 = vmmov %vm2912_vm1 }
 0x5da   :  { %v1406_v34 = vsel %vm100_vm2, %v2342_v27, %v2312_v63  ;;  %v1404_v35 = vsel %vm100_vm2, %v2311_v9, %v2341_v28  ;;  %2072 = vmatprep.subr.bf16.mxu1 %v2381_v3  ;;  %v1405_v41 = vsel %vm100_vm2, %v2341_v28, %v2342_v27  ;;  %2056 = vmatpush1.bf16.msra.mxu0 %v2055_v59  ;;  %vm2913_vm2 = vmmov %vm2912_vm1 }
 0x5db   :  { %v2073_v38 = vpack.c.bf16 %v1431_v33, %v1406_v34  ;;  %v2365_v46 = vpop.permute.xlu1 %2364  ;;  %v2350_v39 = vpop.permute.xlu0 %2349  ;;  %v2059_v42 = vpack.c.bf16 %v1429_v37, %v1404_v35  ;;  %v1481_v43 = vsel %vm178_vm5, %v2357_v44, %v2327_v29  ;;  %v1479_v12 = vsel %vm178_vm5, %v2326_v36, %v2356_v32 }
 0x5dc   :  { %v2352_v13 = vunpack.i.h.bf16 %v2350_v39  ;;  %v2351_v49 = vunpack.i.l.bf16 %v2350_v39  ;;  %v2057_v48 = vpack.c.bf16 %v1430_v50, %v1405_v41  ;;  %v1480_v47 = vsel %vm178_vm5, %v2356_v32, %v2357_v44  ;;  %vm2915_vm5 = vmmov %vm2905_vm11 }
 0x5dd   :  { %2074 = vmatpush3.bf16.msra.mxu1 %v2073_v38  ;;  %v2367_v58 = vunpack.i.h.bf16 %v2365_v46  ;;  %v2366_v60 = vunpack.i.l.bf16 %v2365_v46 }
 0x5de   :  { %v1456_v23 = vsel %vm152_vm4, %v2352_v13, %v2322_v8  ;;  %v1454_v26 = vsel %vm152_vm4, %v2321_v6, %v2351_v49  ;;  %2075 = vmatprep.subr.bf16.mxu1 %v2381_v3  ;;  %v1455_v11 = vsel %vm152_vm4, %v2351_v49, %v2352_v13  ;;  %2058 = vmatprep.subr.bf16.mxu0 %v2057_v48 }
 0x5df   :  { %v2076_v61 = vpack.c.bf16 %v1481_v43, %v1456_v23  ;;  %v2063_v57 = vpack.c.bf16 %v1479_v12, %v1454_v26  ;;  %v2370_v62 = vpop.permute.xlu1 %2369  ;;  %v2360_v0 = vpop.permute.xlu0 %2359  ;;  %v2061_v1 = vpack.c.bf16 %v1480_v47, %v1455_v11  ;;  %2060 = vmatpush1.bf16.msra.mxu0 %v2059_v42  ;;  %v1530_v16 = vsel %vm230_vm7, %v2366_v60, %v2367_v58 }
 0x5e0   :  { %v2372_v2 = vunpack.i.h.bf16 %v2370_v62  ;;  %v2371_v4 = vunpack.i.l.bf16 %v2370_v62  ;;  %v2362_v5 = vunpack.i.h.bf16 %v2360_v0  ;;  %v2361_v24 = vunpack.i.l.bf16 %v2360_v0  ;;  %v1839_v0 = vld [vmem:[%s2895_s0 + $0x28] sm:$0xff] }
 0x5e1   :  { %2062 = vmatprep.subr.bf16.mxu0 %v2061_v1  ;;  %2077 = vmatpush3.bf16.msra.mxu1 %v2076_v61 }
 0x5e2   :  { %v1529_v40 = vsel %vm230_vm7, %v2371_v4, %v2366_v60  ;;  %v1531_v63 = vsel %vm230_vm7, %v2367_v58, %v2372_v2  ;;  %v1506_v9 = vsel %vm204_vm6, %v2362_v5, %v2332_v25  ;;  %v1504_v8 = vsel %vm204_vm6, %v2331_v31, %v2361_v24  ;;  %2078 = vmatprep.subr.bf16.mxu1 %v2381_v3 }
 0x5e3   :  { %v2079_v6 = vpack.c.bf16 %v1531_v63, %v1506_v9  ;;  %v1551_v10 = vpop.permute.xlu1 %1550  ;;  %v1549_v14 = vpop.permute.xlu0 %1548  ;;  %v1505_v15 = vsel %vm204_vm6, %v2361_v24, %v2362_v5  ;;  %v2067_v17 = vpack.c.bf16 %v1529_v40, %v1504_v8  ;;  %2064 = vmatpush1.bf16.msra.mxu0 %v2063_v57  ;;  %vm2916_vm6 = vmmov %vm2915_vm5 }
 0x5e4   :  { %v2065_v18 = vpack.c.bf16 %v1530_v16, %v1505_v15  ;;  %v1555_v3 = vsel %vm2913_vm2, %v1549_v14, %v1551_v10 }
 0x5e5   :  { %2080 = vmatpush3.bf16.msra.mxu1 %v2079_v6 }
 0x5e6   :  { %2066 = vmatprep.subr.bf16.mxu0 %v2065_v18  ;;  %1964 = vmatprep.subr.mxu1 %v2387_v7 }
 0x5e7   :  { %v1553_v19 = vpop.permute.xlu1 %1552  ;;  %v1547_v20 = vpop.permute.xlu0 %1546  ;;  %2068 = vmatpush1.bf16.msra.mxu0 %v2067_v17 }
 0x5e8   :  { %v1556_v21 = vsel %vm2912_vm1, %v1551_v10, %v1553_v19  ;;  %v1554_v22 = vsel %vm2914_vm3, %v1547_v20, %v1549_v14  ;;  %1610 = vmatprep.subr.mxu0 %v1555_v3 }
 0x5e9   :  { %1965 = vmatpush3.msra.mxu1 %v1556_v21 }
 0x5ea   :  { %1967 = vmatmul.mubr.msk.f32.vlgmr.msra.gmra.mrb[6].mxu1 %vm2915_vm5, %v2672_v45 }
 0x5eb   :  { %1611 = vmatpush1.msra.mxu0 %v1554_v22  ;;  %v907_v44 = vpop.permute.xlu1 %906 }
 0x5ec   :  { %1836 = vmatmul.mubr.msk.f32.vlgmr.msra.gmra.mrb[6].mxu0 %vm2916_vm6, %v2672_v45 }
 0x5ef   :  { %v911_v29 = vpop.permute.xlu1 %910 }
 0x5f3   :  { %v913_v33 = vpop.permute.xlu1 %912 }
 0x5f4   :  { %v916_v38 = vsel %vm152_vm4, %v911_v29, %v913_v33 }
 0x621   :  { %v877_v25 = vpop.xlane.xlu0 %876 }
 0x622   :  { %v885_v7 = vmul.f32 0.00390625, %v877_v25 }
 0x624   :  { %v887_v27 = vmul.f32 %v885_v7, %v885_v7  ;;  %v892_v35 = vsub.f32 %v2733_v54, %v885_v7  ;;  %v890_v36 = vsub.f32 %v2735_v55, %v885_v7  ;;  %v891_v37 = vsub.f32 %v2741_v30, %v885_v7 }
 0x625   :  { %v884_v59 = vpop.xlane.xlu0 %883 }
 0x626   :  { %v886_v28 = vmul.f32 0.00390625, %v884_v59 }
 0x628   :  { %v888_v31 = vsub.f32 %v886_v28, %v887_v27 }
 0x629   :  { %v909_v34 = vpop.permute.xlu0 %908 }
 0x62a   :  { %v889_v32 = vmax.f32 %v888_v31, 0.0  ;;  %v914_v46 = vsel %vm152_vm4, %v907_v44, %v909_v34  ;;  %v915_v39 = vsel %vm152_vm4, %v909_v34, %v911_v29 }
 0x62c   :  { %v893_v56 = vadd.f32 1e-05, %v889_v32 }
 0x62e   :  { %2377 = vrsqrt.f32 %v893_v56 }
 0x638   :  { %v2378_v45 = vpop.eup %2377 }
 0x639   :  { %v897_v41 = vmul.f32 %v2378_v45, %v892_v35  ;;  %v895_v42 = vmul.f32 %v2378_v45, %v890_v36  ;;  %v896_v13 = vmul.f32 %v2378_v45, %v891_v37 }
 0x63b   :  { %v922_v49 = vadd.f32 %v916_v38, %v897_v41  ;;  %v920_v50 = vadd.f32 %v914_v46, %v895_v42  ;;  %v921_v43 = vadd.f32 %v915_v39, %v896_v13 }
 0x63d   :  { %925 = vst [vmem:[%s2898_s3 + $0x10] sm:$0xff] %v922_v49  ;;  %923 = vst [vmem:[%s2898_s3] sm:$0xff] %v920_v50 }
 0x63e   :  { %924 = vst [vmem:[%s2898_s3 + $0x8] sm:$0xff] %v921_v43 }
 0x6bd   :  { %v1731_v54 = vpop.f32.mrb[6].mxu1 }
 0x6be   :  { %v1968_v55 = vpop.f32.mrb[7].mxu1  ;;  %v1737_v12 = vmul.f32 %v1731_v54, %v2504_v52  ;;  %v1838_v52 = vld [vmem:[%s2895_s0 + $0x20] sm:$0xff] }
 0x6bf   :  { %v1660_v30 = vpop.f32.mrb[6].mxu0 }
 0x6c0   :  { %v1735_v48 = vmul.f32 %v1660_v30, %v2501_v51  ;;  %v1662_v47 = vpop.f32.mrb[7].mxu0  ;;  %v1744_v60 = vmul.f32 %v1737_v12, %v1737_v12  ;;  %v1841_v51 = vld [vmem:[%s2895_s0 + $0x38] sm:$0xff] }
 0x6c1   :  { %v1736_v58 = vmul.f32 %v1662_v47, %v2507_v53  ;;  %v1840_v53 = vld [vmem:[%s2895_s0 + $0x30] sm:$0xff] }
 0x6c2   :  { %v1742_v23 = vmul.f32 %v1735_v48, %v1735_v48 }
 0x6c3   :  { %v1738_v26 = vadd.f32 %v1736_v58, %v1735_v48  ;;  %v1743_v11 = vmul.f32 %v1736_v58, %v1736_v58 }
 0x6c5   :  { %v1739_v61 = vadd.f32 %v1738_v26, %v1737_v12  ;;  %v1745_v57 = vadd.f32 %v1743_v11, %v1742_v23 }
 0x6c7   :  { %1740 = vadd.xlane.f32.xlu1 %v1739_v61  ;;  %v1746_v62 = vadd.f32 %v1745_v57, %v1744_v60 }
 0x6c9   :  { %1747 = vadd.xlane.f32.xlu0 %v1746_v62 }
 0x6d8   :  { %1772 = vrot.lane.b32.xlu1 %v1839_v0, %s2386_s24 }
 0x6dc   :  { %1776 = vrot.lane.b32.xlu1 %v1841_v51, %s2386_s24 }
 0x6df   :  { %1770 = vrot.lane.b32.xlu0 %v1838_v52, %s2386_s24 }
 0x6e3   :  { %1774 = vrot.lane.b32.xlu0 %v1840_v53, %s2386_s24 }
 0x754   :  { %v1741_v1 = vpop.xlane.xlu1 %1740 }
 0x755   :  { %v1749_v2 = vmul.f32 0.00390625, %v1741_v1 }
 0x756   :  { %v1748_v4 = vpop.xlane.xlu0 %1747 }
 0x757   :  { %v1750_v5 = vmul.f32 0.00390625, %v1748_v4  ;;  %v1751_v24 = vmul.f32 %v1749_v2, %v1749_v2  ;;  %v1754_v15 = vsub.f32 %v1660_v30, %v1749_v2  ;;  %v1755_v16 = vsub.f32 %v1662_v47, %v1749_v2 }
 0x758   :  { %v1773_v8 = vpop.permute.xlu1 %1772  ;;  %v1756_v17 = vsub.f32 %v1731_v54, %v1749_v2 }
 0x759   :  { %v1752_v40 = vsub.f32 %v1750_v5, %v1751_v24 }
 0x75a   :  { %v1771_v6 = vpop.permute.xlu0 %1770 }
 0x75b   :  { %v1753_v63 = vmax.f32 %v1752_v40, 0.0  ;;  %v1778_v22 = vsel %vm152_vm4, %v1771_v6, %v1773_v8 }
 0x75c   :  { %v1777_v10 = vpop.permute.xlu1 %1776 }
 0x75d   :  { %v1757_v9 = vadd.f32 1e-05, %v1753_v63 }
 0x75e   :  { %v1775_v14 = vpop.permute.xlu0 %1774 }
 0x75f   :  { %2379 = vrsqrt.f32 %v1757_v9  ;;  %v1780_v19 = vsel %vm152_vm4, %v1775_v14, %v1777_v10  ;;  %v1779_v25 = vsel %vm152_vm4, %v1773_v8, %v1775_v14 }
 0x769   :  { %v2380_v18 = vpop.eup %2379 }
 0x76a   :  { %v1759_v20 = vmul.f32 %v2380_v18, %v1754_v15  ;;  %v1760_v21 = vmul.f32 %v2380_v18, %v1755_v16  ;;  %v1761_v3 = vmul.f32 %v2380_v18, %v1756_v17 }
 0x76c   :  { %v1784_v7 = vadd.f32 %v1778_v22, %v1759_v20  ;;  %v1785_v59 = vadd.f32 %v1779_v25, %v1760_v21  ;;  %v1786_v27 = vadd.f32 %v1780_v19, %v1761_v3 }
 0x76e   :  { %1842 = vst [vmem:[%s2898_s3 + $0x18] sm:$0xff] %v1784_v7  ;;  %1843 = vst [vmem:[%s2898_s3 + $0x20] sm:$0xff] %v1785_v59 }
 0x76f   :  { %1844 = vst [vmem:[%s2898_s3 + $0x28] sm:$0xff] %v1786_v27 }

</bundles_post_ra>
